<compile_context>
chip_gen: v5e
topology: v5e:2x2
jax: 0.10.0
libtpu: 0.0.40
codegen_flags: <defaults>
</compile_context>

<pallas_src>
import math
from functools import partial

import jax
import jax.numpy as jnp
from jax.experimental import pallas as pl
from jax.experimental.pallas import tpu as pltpu

EPS = 1e-5  # nn.LayerNorm default eps

PARAM_ORDER = ("ln1_w", "ln1_b", "wqkv_t", "bqkv", "wo_t", "bo",
               "ln2_w", "ln2_b", "w1_t", "b1", "w2_t", "b2")


def _layernorm(x, w, b):
    mu = jnp.mean(x, axis=-1, keepdims=True)
    xc = x - mu
    var = jnp.mean(xc * xc, axis=-1, keepdims=True)
    return xc * jax.lax.rsqrt(var + EPS) * w + b


def _gelu_exact(x):
    # nn.GELU() default (approximate='none'): exact erf formulation.
    return 0.5 * x * (1.0 + jax.lax.erf(x * (1.0 / math.sqrt(2.0))))


def _block_math(x, p, to_heads, from_heads):
    """Shared transformer-block math on a 2-D token matrix x: (M, E) float32.

    GEMMs run with bf16 operands / f32 MXU accumulation; LayerNorm, softmax and GELU
    stay f32.  The 1/sqrt(head_dim) scale is already folded into the Q columns of
    wqkv_t / bqkv (see prepare_kernel_params)."""
    (ln1_w, ln1_b, wqkv_t, bqkv, wo_t, bo,
     ln2_w, ln2_b, w1_t, b1, w2_t, b2) = p
    E = x.shape[-1]

    # ---- attention branch: x + MHA(LN1(x)) ----
    h = _layernorm(x, ln1_w, ln1_b)
    qkv = jnp.dot(h.astype(jnp.bfloat16), wqkv_t,
                  preferred_element_type=jnp.float32) + bqkv            # (M, 3E)
    q = to_heads(qkv[:, 0 * E:1 * E]).astype(jnp.bfloat16)              # (N, S, Dh)
    k = to_heads(qkv[:, 1 * E:2 * E]).astype(jnp.bfloat16)
    v = to_heads(qkv[:, 2 * E:3 * E]).astype(jnp.bfloat16)

    # one batched QK / PV einsum pair over all (batch, head) slices (no per-head loop)
    s = jnp.einsum("nqd,nkd->nqk", q, k, preferred_element_type=jnp.float32)
    s = s - jnp.max(s, axis=-1, keepdims=True)
    pr = jnp.exp(s)
    pr = pr * pl.reciprocal(jnp.sum(pr, axis=-1, keepdims=True), approx=True)
    a = jnp.einsum("nqk,nkd->nqd", pr.astype(jnp.bfloat16), v,
                   preferred_element_type=jnp.float32)                  # (N, S, Dh)

    attn = from_heads(a)                                                # (M, E)
    attn = jnp.dot(attn.astype(jnp.bfloat16), wo_t,
                   preferred_element_type=jnp.float32) + bo
    x1 = x + attn

    # ---- MLP branch: x1 + FC2(GELU(FC1(LN2(x1)))) ----
    h2 = _layernorm(x1, ln2_w, ln2_b)
    m1 = jnp.dot(h2.astype(jnp.bfloat16), w1_t,
                 preferred_element_type=jnp.float32) + b1
    y = jnp.dot(_gelu_exact(m1).astype(jnp.bfloat16), w2_t,
                preferred_element_type=jnp.float32) + b2
    return x1 + y


# ------------- primary kernel: single invocation, batch folded into GEMM rows ---------

def _fused_kernel(S, B, H, x_ref, *refs):
    *prefs, o_ref = refs
    p = tuple(r[...] for r in prefs)
    E = x_ref.shape[-1]
    Dh = E // H

    def to_heads(m):        # (S*B, E) -> (B*H, S, Dh)
        return jnp.transpose(m.reshape(S, B, H, Dh), (1, 2, 0, 3)).reshape(B * H, S, Dh)

    def from_heads(a):      # (B*H, S, Dh) -> (S*B, E)
        return jnp.transpose(a.reshape(B, H, S, Dh), (2, 0, 1, 3)).reshape(S * B, E)

    out = _block_math(x_ref[...].astype(jnp.float32), p, to_heads, from_heads)
    o_ref[...] = out.astype(o_ref.dtype)


def _call_fused(x_sbe, param_list, num_heads):
    S, B, E = x_sbe.shape
    x_rows = x_sbe.reshape(S * B, E)        # free row-major reshape: no HBM transpose
    vmem = pltpu.MemorySpace.VMEM
    out = pl.pallas_call(
        partial(_fused_kernel, S, B, num_heads),
        out_shape=jax.ShapeDtypeStruct((S * B, E), x_sbe.dtype),
        in_specs=[pl.BlockSpec(memory_space=vmem)] * (1 + len(param_list)),
        out_specs=pl.BlockSpec(memory_space=vmem),
        # No grid: the whole problem (a few KB of activations + <100 KB of bf16 weights)
        # fits in VMEM, so there is no per-step pipeline overhead and the GEMMs see
        # M = S*B rows.  At production sizes (large B/S/E) reintroduce a "parallel"
        # batch grid (2 TCs on v7x) and Buffered(1)/K-tiled weight specs so the
        # resident weights respect v7x's 64 MiB VMEM.
    )(x_rows, *param_list)
    return out.reshape(S, B, E)             # free reshape back to (S, B, E)


# ------------- fallback kernel: per-batch "parallel" grid, slice/stack head packing ---

def _per_batch_kernel(H, x_ref, *refs):
    *prefs, o_ref = refs
    p = tuple(r[...] for r in prefs)
    _, S, E = x_ref.shape
    Dh = E // H

    def to_heads(m):        # (S, E) -> (H, S, Dh): lane slices + leading-axis stack only
        return jnp.stack([m[:, h * Dh:(h + 1) * Dh] for h in range(H)], axis=0)

    def from_heads(a):      # (H, S, Dh) -> (S, E): lane-axis concat
        return jnp.concatenate([a[h] for h in range(H)], axis=-1)

    out = _block_math(x_ref[0].astype(jnp.float32), p, to_heads, from_heads)
    o_ref[0] = out.astype(o_ref.dtype)


def _call_per_batch(x_sbe, param_list, num_heads):
    S, B, E = x_sbe.shape
    x_bse = jnp.transpose(x_sbe, (1, 0, 2))
    weight_specs = [pl.BlockSpec(w.shape, lambda b: (0, 0)) for w in param_list]
    out = pl.pallas_call(
        partial(_per_batch_kernel, num_heads),
        out_shape=jax.ShapeDtypeStruct((B, S, E), x_sbe.dtype),
        grid_spec=pltpu.PrefetchScalarGridSpec(
            num_scalar_prefetch=0,
            grid=(B,),
            in_specs=[pl.BlockSpec((1, S, E), lambda b: (b, 0, 0))] + weight_specs,
            out_specs=pl.BlockSpec((1, S, E), lambda b: (b, 0, 0)),
        ),
        compiler_params=pltpu.CompilerParams(dimension_semantics=("parallel",)),
    )(x_bse, *param_list)
    return jnp.transpose(out, (1, 0, 2))


def transformer_block(x_sbe, kparams, num_heads):
    """x_sbe: (S, B, E) float32 in nn.MultiheadAttention's batch_first=False layout.
    kparams: output of prepare_kernel_params()."""
    param_list = [kparams[k] for k in PARAM_ORDER]
    try:
        return jax.block_until_ready(_call_fused(x_sbe, param_list, num_heads))
    except Exception:
        # Compatibility fallback for Mosaic builds without general in-kernel relayout
        # (reshape/transpose) support: per-batch "parallel" grid, heads packed with
        # slices/stack/concat, still a single batched QK/PV einsum pair and the same
        # bf16 / folded-scale / approx-reciprocal math.
        return jax.block_until_ready(_call_per_batch(x_sbe, param_list, num_heads))


# ------------------------------ params / reference ------------------------------------

def prepare_kernel_params(params, num_heads):
    """One-time parameter transform for the kernel:
      * fold the 1/sqrt(head_dim) attention scale into the Q columns of the QKV
        projection (weight and bias) -> no per-call q scaling;
      * pre-cast the GEMM weight matrices to bf16 (MXU-native; accumulation stays f32).
    LayerNorm params and biases stay f32."""
    E = params["wo_t"].shape[0]
    Dh = E // num_heads
    scale = 1.0 / math.sqrt(Dh)
    col_scale = jnp.concatenate(
        [jnp.full((E,), scale, jnp.float32), jnp.ones((2 * E,), jnp.float32)])
    p = dict(params)
    p["wqkv_t"] = (params["wqkv_t"] * col_scale[None, :]).astype(jnp.bfloat16)
    p["bqkv"] = params["bqkv"] * col_scale[None, :]
    p["wo_t"] = params["wo_t"].astype(jnp.bfloat16)
    p["w1_t"] = params["w1_t"].astype(jnp.bfloat16)
    p["w2_t"] = params["w2_t"].astype(jnp.bfloat16)
    return p


def init_params(key, embed_dim, mlp_ratio):
    E = embed_dim
    Hm = int(E * mlp_ratio)
    ks = jax.random.split(key, 8)

    def w(k, shape, scale=0.05):
        return jax.random.normal(k, shape, dtype=jnp.float32) * scale

    # Linear weights are stored pre-transposed (y = x @ W^T -> x @ W_t).
    return dict(
        ln1_w=jnp.ones((1, E), jnp.float32), ln1_b=jnp.zeros((1, E), jnp.float32),
        wqkv_t=w(ks[0], (E, 3 * E)),          # in_proj_weight.T
        bqkv=w(ks[1], (1, 3 * E), 0.02),      # in_proj_bias (qkv_bias=True)
        wo_t=w(ks[2], (E, E)),                # out_proj.weight.T
        bo=w(ks[3], (1, E), 0.02),            # out_proj.bias
        ln2_w=jnp.ones((1, E), jnp.float32), ln2_b=jnp.zeros((1, E), jnp.float32),
        w1_t=w(ks[4], (E, Hm)),               # mlp[0].weight.T
        b1=w(ks[5], (1, Hm), 0.02),           # mlp[0].bias
        w2_t=w(ks[6], (Hm, E)),               # mlp[2].weight.T
        b2=w(ks[7], (1, E), 0.02),            # mlp[2].bias
    )


def reference_block(x_sbe, params, num_heads):
    """Pure-JAX f32 reference mirroring the PyTorch module's forward (eval mode)."""
    S, B, E = x_sbe.shape
    Dh = E // num_heads
    scale = 1.0 / math.sqrt(Dh)

    h = _layernorm(x_sbe, params["ln1_w"], params["ln1_b"])
    qkv = h @ params["wqkv_t"] + params["bqkv"]                 # (S, B, 3E)
    q, k, v = jnp.split(qkv, 3, axis=-1)
    q = q.reshape(S, B, num_heads, Dh) * scale
    k = k.reshape(S, B, num_heads, Dh)
    v = v.reshape(S, B, num_heads, Dh)
    s = jnp.einsum("qbhd,kbhd->bhqk", q, k)
    p = jax.nn.softmax(s, axis=-1)
    a = jnp.einsum("bhqk,kbhd->qbhd", p, v).reshape(S, B, E)
    a = a @ params["wo_t"] + params["bo"]
    x1 = x_sbe + a

    h2 = _layernorm(x1, params["ln2_w"], params["ln2_b"])
    m = _gelu_exact(h2 @ params["w1_t"] + params["b1"])
    return x1 + (m @ params["w2_t"] + params["b2"])


if __name__ == "__main__":
    # Module config: embed_dim=32, num_heads=4, mlp_ratio=4.0, qkv_bias=True.
    S, B, E = 8, 2, 32
    num_heads = 4
    mlp_ratio = 4.0

    key = jax.random.PRNGKey(0)
    kx, kp = jax.random.split(key)
    x = jax.random.normal(kx, (S, B, E), dtype=jnp.float32)     # (seq, batch, embed)
    params = init_params(kp, E, mlp_ratio)
    kparams = prepare_kernel_params(params, num_heads)          # one-time fold + bf16 cast

    out = transformer_block(x, kparams, num_heads)
    out = jax.block_until_ready(out)

    ref = reference_block(x, params, num_heads)
    assert out.shape == (S, B, E)
    # Tolerance reflects bf16 MXU operands + approx-reciprocal softmax vs an f32 reference.
    assert jnp.allclose(out, ref, atol=2e-2, rtol=2e-2), "kernel/reference mismatch"

    print("KERNEL_OK")
</pallas_src>

<mosaic_0001>
module attributes {stable_mosaic.version = 11 : i64} {
  func.func @_fused_kernel(%arg0: memref<16x32xf32, #tpu.memory_space<vmem>>, %arg1: memref<1x32xf32, #tpu.memory_space<vmem>>, %arg2: memref<1x32xf32, #tpu.memory_space<vmem>>, %arg3: memref<32x96xbf16, #tpu.memory_space<vmem>>, %arg4: memref<1x96xf32, #tpu.memory_space<vmem>>, %arg5: memref<32x32xbf16, #tpu.memory_space<vmem>>, %arg6: memref<1x32xf32, #tpu.memory_space<vmem>>, %arg7: memref<1x32xf32, #tpu.memory_space<vmem>>, %arg8: memref<1x32xf32, #tpu.memory_space<vmem>>, %arg9: memref<32x128xbf16, #tpu.memory_space<vmem>>, %arg10: memref<1x128xf32, #tpu.memory_space<vmem>>, %arg11: memref<128x32xbf16, #tpu.memory_space<vmem>>, %arg12: memref<1x32xf32, #tpu.memory_space<vmem>>, %arg13: memref<16x32xf32, #tpu.memory_space<vmem>>) attributes {dimension_semantics = [], scalar_prefetch = 0 : i64, scratch_operands = 0 : i64, tpu.core_type = #tpu.core_type<tc>} {
    %c0 = arith.constant 0 : index
    %c0_0 = arith.constant 0 : index
    %0 = vector.load %arg1[%c0, %c0_0] : memref<1x32xf32, #tpu.memory_space<vmem>>, vector<1x32xf32>
    %c0_1 = arith.constant 0 : index
    %c0_2 = arith.constant 0 : index
    %1 = vector.load %arg2[%c0_1, %c0_2] : memref<1x32xf32, #tpu.memory_space<vmem>>, vector<1x32xf32>
    %c0_3 = arith.constant 0 : index
    %c0_4 = arith.constant 0 : index
    %2 = vector.load %arg3[%c0_3, %c0_4] : memref<32x96xbf16, #tpu.memory_space<vmem>>, vector<32x96xbf16>
    %c0_5 = arith.constant 0 : index
    %c0_6 = arith.constant 0 : index
    %3 = vector.load %arg4[%c0_5, %c0_6] : memref<1x96xf32, #tpu.memory_space<vmem>>, vector<1x96xf32>
    %c0_7 = arith.constant 0 : index
    %c0_8 = arith.constant 0 : index
    %4 = vector.load %arg5[%c0_7, %c0_8] : memref<32x32xbf16, #tpu.memory_space<vmem>>, vector<32x32xbf16>
    %c0_9 = arith.constant 0 : index
    %c0_10 = arith.constant 0 : index
    %5 = vector.load %arg6[%c0_9, %c0_10] : memref<1x32xf32, #tpu.memory_space<vmem>>, vector<1x32xf32>
    %c0_11 = arith.constant 0 : index
    %c0_12 = arith.constant 0 : index
    %6 = vector.load %arg7[%c0_11, %c0_12] : memref<1x32xf32, #tpu.memory_space<vmem>>, vector<1x32xf32>
    %c0_13 = arith.constant 0 : index
    %c0_14 = arith.constant 0 : index
    %7 = vector.load %arg8[%c0_13, %c0_14] : memref<1x32xf32, #tpu.memory_space<vmem>>, vector<1x32xf32>
    %c0_15 = arith.constant 0 : index
    %c0_16 = arith.constant 0 : index
    %8 = vector.load %arg9[%c0_15, %c0_16] : memref<32x128xbf16, #tpu.memory_space<vmem>>, vector<32x128xbf16>
    %c0_17 = arith.constant 0 : index
    %c0_18 = arith.constant 0 : index
    %9 = vector.load %arg10[%c0_17, %c0_18] : memref<1x128xf32, #tpu.memory_space<vmem>>, vector<1x128xf32>
    %c0_19 = arith.constant 0 : index
    %c0_20 = arith.constant 0 : index
    %10 = vector.load %arg11[%c0_19, %c0_20] : memref<128x32xbf16, #tpu.memory_space<vmem>>, vector<128x32xbf16>
    %c0_21 = arith.constant 0 : index
    %c0_22 = arith.constant 0 : index
    %11 = vector.load %arg12[%c0_21, %c0_22] : memref<1x32xf32, #tpu.memory_space<vmem>>, vector<1x32xf32>
    %c0_23 = arith.constant 0 : index
    %c0_24 = arith.constant 0 : index
    %12 = vector.load %arg0[%c0_23, %c0_24] : memref<16x32xf32, #tpu.memory_space<vmem>>, vector<16x32xf32>
    %cst = arith.constant dense<0.000000e+00> : vector<16xf32>
    %13 = vector.multi_reduction <add>, %12, %cst [1] : vector<16x32xf32> to vector<16xf32>
    %14 = vector.shape_cast %13 : vector<16xf32> to vector<16x1xf32>
    %cst_25 = arith.constant 3.200000e+01 : f32
    %15 = vector.broadcast %cst_25 : f32 to vector<16x1xf32>
    %16 = arith.divf %14, %15 : vector<16x1xf32>
    %17 = vector.broadcast %16 : vector<16x1xf32> to vector<16x32xf32>
    %18 = arith.subf %12, %17 : vector<16x32xf32>
    %19 = arith.mulf %18, %18 : vector<16x32xf32>
    %cst_26 = arith.constant dense<0.000000e+00> : vector<16xf32>
    %20 = vector.multi_reduction <add>, %19, %cst_26 [1] : vector<16x32xf32> to vector<16xf32>
    %21 = vector.shape_cast %20 : vector<16xf32> to vector<16x1xf32>
    %cst_27 = arith.constant 3.200000e+01 : f32
    %22 = vector.broadcast %cst_27 : f32 to vector<16x1xf32>
    %23 = arith.divf %21, %22 : vector<16x1xf32>
    %cst_28 = arith.constant 9.99999974E-6 : f32
    %24 = vector.broadcast %cst_28 : f32 to vector<16x1xf32>
    %25 = arith.addf %23, %24 : vector<16x1xf32>
    %26 = math.rsqrt %25 : vector<16x1xf32>
    %27 = vector.broadcast %26 : vector<16x1xf32> to vector<16x32xf32>
    %28 = arith.mulf %18, %27 : vector<16x32xf32>
    %29 = vector.broadcast %0 : vector<1x32xf32> to vector<16x32xf32>
    %30 = arith.mulf %28, %29 : vector<16x32xf32>
    %31 = vector.broadcast %1 : vector<1x32xf32> to vector<16x32xf32>
    %32 = arith.addf %30, %31 : vector<16x32xf32>
    %33 = arith.truncf %32 : vector<16x32xf32> to vector<16x32xbf16>
    %cst_29 = arith.constant dense<0.000000e+00> : vector<16x96xf32>
    %34 = tpu.matmul %33, %2, %cst_29 {dimension_numbers = #tpu.dot_dimension_numbers<[1], [0], [0], [1], [0, 0, 1, 1], [], []>} : vector<16x32xbf16>, vector<32x96xbf16>, vector<16x96xf32> -> vector<16x96xf32>
    %35 = vector.broadcast %3 : vector<1x96xf32> to vector<16x96xf32>
    %36 = arith.addf %34, %35 : vector<16x96xf32>
    %37 = vector.extract_strided_slice %36 {offsets = [0, 0], sizes = [16, 32], strides = [1, 1]} : vector<16x96xf32> to vector<16x32xf32>
    %38 = vector.shape_cast %37 : vector<16x32xf32> to vector<8x2x4x8xf32>
    %39 = tpu.transpose %38, [1, 2, 0, 3] : vector<8x2x4x8xf32> -> vector<2x4x8x8xf32>
    %40 = vector.shape_cast %39 : vector<2x4x8x8xf32> to vector<8x8x8xf32>
    %41 = arith.truncf %40 : vector<8x8x8xf32> to vector<8x8x8xbf16>
    %42 = vector.extract_strided_slice %36 {offsets = [0, 32], sizes = [16, 32], strides = [1, 1]} : vector<16x96xf32> to vector<16x32xf32>
    %43 = vector.shape_cast %42 : vector<16x32xf32> to vector<8x2x4x8xf32>
    %44 = tpu.transpose %43, [1, 2, 0, 3] : vector<8x2x4x8xf32> -> vector<2x4x8x8xf32>
    %45 = vector.shape_cast %44 : vector<2x4x8x8xf32> to vector<8x8x8xf32>
    %46 = arith.truncf %45 : vector<8x8x8xf32> to vector<8x8x8xbf16>
    %47 = vector.extract_strided_slice %36 {offsets = [0, 64], sizes = [16, 32], strides = [1, 1]} : vector<16x96xf32> to vector<16x32xf32>
    %48 = vector.shape_cast %47 : vector<16x32xf32> to vector<8x2x4x8xf32>
    %49 = tpu.transpose %48, [1, 2, 0, 3] : vector<8x2x4x8xf32> -> vector<2x4x8x8xf32>
    %50 = vector.shape_cast %49 : vector<2x4x8x8xf32> to vector<8x8x8xf32>
    %51 = arith.truncf %50 : vector<8x8x8xf32> to vector<8x8x8xbf16>
    "tpu.trace_start"() <{level = 10 : i32, message = "nqd,nkd->nqk"}> : () -> ()
    %cst_30 = arith.constant dense<0.000000e+00> : vector<8x8x8xf32>
    %52 = tpu.matmul %41, %46, %cst_30 {dimension_numbers = #tpu.dot_dimension_numbers<[2], [2], [1], [1], [0, 0, 0, 1, 1, 1], [0], [0]>} : vector<8x8x8xbf16>, vector<8x8x8xbf16>, vector<8x8x8xf32> -> vector<8x8x8xf32>
    "tpu.trace_stop"() : () -> ()
    %cst_31 = arith.constant dense<0xFF800000> : vector<8x8xf32>
    %53 = vector.multi_reduction <maximumf>, %52, %cst_31 [2] : vector<8x8x8xf32> to vector<8x8xf32>
    %54 = vector.shape_cast %53 : vector<8x8xf32> to vector<8x8x1xf32>
    %55 = vector.broadcast %54 : vector<8x8x1xf32> to vector<8x8x8xf32>
    %56 = arith.subf %52, %55 : vector<8x8x8xf32>
    %57 = math.exp %56 : vector<8x8x8xf32>
    %cst_32 = arith.constant dense<0.000000e+00> : vector<8x8xf32>
    %58 = vector.multi_reduction <add>, %57, %cst_32 [2] : vector<8x8x8xf32> to vector<8x8xf32>
    %59 = vector.shape_cast %58 : vector<8x8xf32> to vector<8x8x1xf32>
    %60 = tpu.reciprocal %59 {approx = true} : vector<8x8x1xf32> -> vector<8x8x1xf32>
    %61 = vector.broadcast %60 : vector<8x8x1xf32> to vector<8x8x8xf32>
    %62 = arith.mulf %57, %61 : vector<8x8x8xf32>
    %63 = arith.truncf %62 : vector<8x8x8xf32> to vector<8x8x8xbf16>
    "tpu.trace_start"() <{level = 10 : i32, message = "nqk,nkd->nqd"}> : () -> ()
    %cst_33 = arith.constant dense<0.000000e+00> : vector<8x8x8xf32>
    %64 = tpu.matmul %63, %51, %cst_33 {dimension_numbers = #tpu.dot_dimension_numbers<[2], [1], [1], [2], [0, 0, 0, 1, 1, 2], [0], [0]>} : vector<8x8x8xbf16>, vector<8x8x8xbf16>, vector<8x8x8xf32> -> vector<8x8x8xf32>
    "tpu.trace_stop"() : () -> ()
    %65 = vector.shape_cast %64 : vector<8x8x8xf32> to vector<2x4x8x8xf32>
    %66 = tpu.transpose %65, [2, 0, 1, 3] : vector<2x4x8x8xf32> -> vector<8x2x4x8xf32>
    %67 = vector.shape_cast %66 : vector<8x2x4x8xf32> to vector<16x32xf32>
    %68 = arith.truncf %67 : vector<16x32xf32> to vector<16x32xbf16>
    %cst_34 = arith.constant dense<0.000000e+00> : vector<16x32xf32>
    %69 = tpu.matmul %68, %4, %cst_34 {dimension_numbers = #tpu.dot_dimension_numbers<[1], [0], [0], [1], [0, 0, 1, 1], [], []>} : vector<16x32xbf16>, vector<32x32xbf16>, vector<16x32xf32> -> vector<16x32xf32>
    %70 = vector.broadcast %5 : vector<1x32xf32> to vector<16x32xf32>
    %71 = arith.addf %69, %70 : vector<16x32xf32>
    %72 = arith.addf %12, %71 : vector<16x32xf32>
    %cst_35 = arith.constant dense<0.000000e+00> : vector<16xf32>
    %73 = vector.multi_reduction <add>, %72, %cst_35 [1] : vector<16x32xf32> to vector<16xf32>
    %74 = vector.shape_cast %73 : vector<16xf32> to vector<16x1xf32>
    %cst_36 = arith.constant 3.200000e+01 : f32
    %75 = vector.broadcast %cst_36 : f32 to vector<16x1xf32>
    %76 = arith.divf %74, %75 : vector<16x1xf32>
    %77 = vector.broadcast %76 : vector<16x1xf32> to vector<16x32xf32>
    %78 = arith.subf %72, %77 : vector<16x32xf32>
    %79 = arith.mulf %78, %78 : vector<16x32xf32>
    %cst_37 = arith.constant dense<0.000000e+00> : vector<16xf32>
    %80 = vector.multi_reduction <add>, %79, %cst_37 [1] : vector<16x32xf32> to vector<16xf32>
    %81 = vector.shape_cast %80 : vector<16xf32> to vector<16x1xf32>
    %cst_38 = arith.constant 3.200000e+01 : f32
    %82 = vector.broadcast %cst_38 : f32 to vector<16x1xf32>
    %83 = arith.divf %81, %82 : vector<16x1xf32>
    %cst_39 = arith.constant 9.99999974E-6 : f32
    %84 = vector.broadcast %cst_39 : f32 to vector<16x1xf32>
    %85 = arith.addf %83, %84 : vector<16x1xf32>
    %86 = math.rsqrt %85 : vector<16x1xf32>
    %87 = vector.broadcast %86 : vector<16x1xf32> to vector<16x32xf32>
    %88 = arith.mulf %78, %87 : vector<16x32xf32>
    %89 = vector.broadcast %6 : vector<1x32xf32> to vector<16x32xf32>
    %90 = arith.mulf %88, %89 : vector<16x32xf32>
    %91 = vector.broadcast %7 : vector<1x32xf32> to vector<16x32xf32>
    %92 = arith.addf %90, %91 : vector<16x32xf32>
    %93 = arith.truncf %92 : vector<16x32xf32> to vector<16x32xbf16>
    %cst_40 = arith.constant dense<0.000000e+00> : vector<16x128xf32>
    %94 = tpu.matmul %93, %8, %cst_40 {dimension_numbers = #tpu.dot_dimension_numbers<[1], [0], [0], [1], [0, 0, 1, 1], [], []>} : vector<16x32xbf16>, vector<32x128xbf16>, vector<16x128xf32> -> vector<16x128xf32>
    %95 = vector.broadcast %9 : vector<1x128xf32> to vector<16x128xf32>
    %96 = arith.addf %94, %95 : vector<16x128xf32>
    %cst_41 = arith.constant 5.000000e-01 : f32
    %97 = vector.broadcast %cst_41 : f32 to vector<16x128xf32>
    %98 = arith.mulf %97, %96 : vector<16x128xf32>
    %cst_42 = arith.constant 0.707106769 : f32
    %99 = vector.broadcast %cst_42 : f32 to vector<16x128xf32>
    %100 = arith.mulf %96, %99 : vector<16x128xf32>
    %101 = math.erf %100 : vector<16x128xf32>
    %cst_43 = arith.constant 1.000000e+00 : f32
    %102 = vector.broadcast %cst_43 : f32 to vector<16x128xf32>
    %103 = arith.addf %102, %101 : vector<16x128xf32>
    %104 = arith.mulf %98, %103 : vector<16x128xf32>
    %105 = arith.truncf %104 : vector<16x128xf32> to vector<16x128xbf16>
    %cst_44 = arith.constant dense<0.000000e+00> : vector<16x32xf32>
    %106 = tpu.matmul %105, %10, %cst_44 {dimension_numbers = #tpu.dot_dimension_numbers<[1], [0], [0], [1], [0, 0, 1, 1], [], []>} : vector<16x128xbf16>, vector<128x32xbf16>, vector<16x32xf32> -> vector<16x32xf32>
    %107 = vector.broadcast %11 : vector<1x32xf32> to vector<16x32xf32>
    %108 = arith.addf %106, %107 : vector<16x32xf32>
    %109 = arith.addf %72, %108 : vector<16x32xf32>
    %c0_45 = arith.constant 0 : index
    %c0_46 = arith.constant 0 : index
    %110 = vector.load %arg13[%c0_45, %c0_46] : memref<16x32xf32, #tpu.memory_space<vmem>>, vector<16x32xf32>
    tpu.vector_store %arg13[%c0_45, %c0_46], %109 {strides = array<i32>} : memref<16x32xf32, #tpu.memory_space<vmem>>, vector<16x32xf32>,
    return
  }
}

module attributes {stable_mosaic.version = 11 : i64} {
  func.func @_per_batch_kernel(%arg0: i32, %arg1: memref<1x8x32xf32, #tpu.memory_space<vmem>>, %arg2: memref<1x32xf32, #tpu.memory_space<vmem>>, %arg3: memref<1x32xf32, #tpu.memory_space<vmem>>, %arg4: memref<32x96xbf16, #tpu.memory_space<vmem>>, %arg5: memref<1x96xf32, #tpu.memory_space<vmem>>, %arg6: memref<32x32xbf16, #tpu.memory_space<vmem>>, %arg7: memref<1x32xf32, #tpu.memory_space<vmem>>, %arg8: memref<1x32xf32, #tpu.memory_space<vmem>>, %arg9: memref<1x32xf32, #tpu.memory_space<vmem>>, %arg10: memref<32x128xbf16, #tpu.memory_space<vmem>>, %arg11: memref<1x128xf32, #tpu.memory_space<vmem>>, %arg12: memref<128x32xbf16, #tpu.memory_space<vmem>>, %arg13: memref<1x32xf32, #tpu.memory_space<vmem>>, %arg14: memref<1x8x32xf32, #tpu.memory_space<vmem>>) attributes {dimension_semantics = [#tpu.dimension_semantics<parallel>], iteration_bounds = array<i64: 2>, scalar_prefetch = 0 : i64, scratch_operands = 0 : i64, tpu.core_type = #tpu.core_type<tc>, window_params = [{transform_indices = @transform_0, window_bounds = array<i64: 1, 8, 32>}, {pipeline_mode = #tpu.pipeline_mode<synchronous>, transform_indices = @transform_1, window_bounds = array<i64: 1, 32>}, {pipeline_mode = #tpu.pipeline_mode<synchronous>, transform_indices = @transform_2, window_bounds = array<i64: 1, 32>}, {pipeline_mode = #tpu.pipeline_mode<synchronous>, transform_indices = @transform_3, window_bounds = array<i64: 32, 96>}, {pipeline_mode = #tpu.pipeline_mode<synchronous>, transform_indices = @transform_4, window_bounds = array<i64: 1, 96>}, {pipeline_mode = #tpu.pipeline_mode<synchronous>, transform_indices = @transform_5, window_bounds = array<i64: 32, 32>}, {pipeline_mode = #tpu.pipeline_mode<synchronous>, transform_indices = @transform_6, window_bounds = array<i64: 1, 32>}, {pipeline_mode = #tpu.pipeline_mode<synchronous>, transform_indices = @transform_7, window_bounds = array<i64: 1, 32>}, {pipeline_mode = #tpu.pipeline_mode<synchronous>, transform_indices = @transform_8, window_bounds = array<i64: 1, 32>}, {pipeline_mode = #tpu.pipeline_mode<synchronous>, transform_indices = @transform_9, window_bounds = array<i64: 32, 128>}, {pipeline_mode = #tpu.pipeline_mode<synchronous>, transform_indices = @transform_10, window_bounds = array<i64: 1, 128>}, {pipeline_mode = #tpu.pipeline_mode<synchronous>, transform_indices = @transform_11, window_bounds = array<i64: 128, 32>}, {pipeline_mode = #tpu.pipeline_mode<synchronous>, transform_indices = @transform_12, window_bounds = array<i64: 1, 32>}, {transform_indices = @transform_13, window_bounds = array<i64: 1, 8, 32>}]} {
    %c0 = arith.constant 0 : index
    %c0_0 = arith.constant 0 : index
    %0 = vector.load %arg2[%c0, %c0_0] : memref<1x32xf32, #tpu.memory_space<vmem>>, vector<1x32xf32>
    %c0_1 = arith.constant 0 : index
    %c0_2 = arith.constant 0 : index
    %1 = vector.load %arg3[%c0_1, %c0_2] : memref<1x32xf32, #tpu.memory_space<vmem>>, vector<1x32xf32>
    %c0_3 = arith.constant 0 : index
    %c0_4 = arith.constant 0 : index
    %2 = vector.load %arg4[%c0_3, %c0_4] : memref<32x96xbf16, #tpu.memory_space<vmem>>, vector<32x96xbf16>
    %c0_5 = arith.constant 0 : index
    %c0_6 = arith.constant 0 : index
    %3 = vector.load %arg5[%c0_5, %c0_6] : memref<1x96xf32, #tpu.memory_space<vmem>>, vector<1x96xf32>
    %c0_7 = arith.constant 0 : index
    %c0_8 = arith.constant 0 : index
    %4 = vector.load %arg6[%c0_7, %c0_8] : memref<32x32xbf16, #tpu.memory_space<vmem>>, vector<32x32xbf16>
    %c0_9 = arith.constant 0 : index
    %c0_10 = arith.constant 0 : index
    %5 = vector.load %arg7[%c0_9, %c0_10] : memref<1x32xf32, #tpu.memory_space<vmem>>, vector<1x32xf32>
    %c0_11 = arith.constant 0 : index
    %c0_12 = arith.constant 0 : index
    %6 = vector.load %arg8[%c0_11, %c0_12] : memref<1x32xf32, #tpu.memory_space<vmem>>, vector<1x32xf32>
    %c0_13 = arith.constant 0 : index
    %c0_14 = arith.constant 0 : index
    %7 = vector.load %arg9[%c0_13, %c0_14] : memref<1x32xf32, #tpu.memory_space<vmem>>, vector<1x32xf32>
    %c0_15 = arith.constant 0 : index
    %c0_16 = arith.constant 0 : index
    %8 = vector.load %arg10[%c0_15, %c0_16] : memref<32x128xbf16, #tpu.memory_space<vmem>>, vector<32x128xbf16>
    %c0_17 = arith.constant 0 : index
    %c0_18 = arith.constant 0 : index
    %9 = vector.load %arg11[%c0_17, %c0_18] : memref<1x128xf32, #tpu.memory_space<vmem>>, vector<1x128xf32>
    %c0_19 = arith.constant 0 : index
    %c0_20 = arith.constant 0 : index
    %10 = vector.load %arg12[%c0_19, %c0_20] : memref<128x32xbf16, #tpu.memory_space<vmem>>, vector<128x32xbf16>
    %c0_21 = arith.constant 0 : index
    %c0_22 = arith.constant 0 : index
    %11 = vector.load %arg13[%c0_21, %c0_22] : memref<1x32xf32, #tpu.memory_space<vmem>>, vector<1x32xf32>
    %c0_23 = arith.constant 0 : index
    %c0_24 = arith.constant 0 : index
    %c0_25 = arith.constant 0 : index
    %12 = vector.load %arg1[%c0_23, %c0_24, %c0_25] : memref<1x8x32xf32, #tpu.memory_space<vmem>>, vector<1x8x32xf32>
    %13 = vector.shape_cast %12 : vector<1x8x32xf32> to vector<8x32xf32>
    %cst = arith.constant dense<0.000000e+00> : vector<8xf32>
    %14 = vector.multi_reduction <add>, %13, %cst [1] : vector<8x32xf32> to vector<8xf32>
    %15 = vector.shape_cast %14 : vector<8xf32> to vector<8x1xf32>
    %cst_26 = arith.constant 3.200000e+01 : f32
    %16 = vector.broadcast %cst_26 : f32 to vector<8x1xf32>
    %17 = arith.divf %15, %16 : vector<8x1xf32>
    %18 = vector.broadcast %17 : vector<8x1xf32> to vector<8x32xf32>
    %19 = arith.subf %13, %18 : vector<8x32xf32>
    %20 = arith.mulf %19, %19 : vector<8x32xf32>
    %cst_27 = arith.constant dense<0.000000e+00> : vector<8xf32>
    %21 = vector.multi_reduction <add>, %20, %cst_27 [1] : vector<8x32xf32> to vector<8xf32>
    %22 = vector.shape_cast %21 : vector<8xf32> to vector<8x1xf32>
    %cst_28 = arith.constant 3.200000e+01 : f32
    %23 = vector.broadcast %cst_28 : f32 to vector<8x1xf32>
    %24 = arith.divf %22, %23 : vector<8x1xf32>
    %cst_29 = arith.constant 9.99999974E-6 : f32
    %25 = vector.broadcast %cst_29 : f32 to vector<8x1xf32>
    %26 = arith.addf %24, %25 : vector<8x1xf32>
    %27 = math.rsqrt %26 : vector<8x1xf32>
    %28 = vector.broadcast %27 : vector<8x1xf32> to vector<8x32xf32>
    %29 = arith.mulf %19, %28 : vector<8x32xf32>
    %30 = vector.broadcast %0 : vector<1x32xf32> to vector<8x32xf32>
    %31 = arith.mulf %29, %30 : vector<8x32xf32>
    %32 = vector.broadcast %1 : vector<1x32xf32> to vector<8x32xf32>
    %33 = arith.addf %31, %32 : vector<8x32xf32>
    %34 = arith.truncf %33 : vector<8x32xf32> to vector<8x32xbf16>
    %cst_30 = arith.constant dense<0.000000e+00> : vector<8x96xf32>
    %35 = tpu.matmul %34, %2, %cst_30 {dimension_numbers = #tpu.dot_dimension_numbers<[1], [0], [0], [1], [0, 0, 1, 1], [], []>} : vector<8x32xbf16>, vector<32x96xbf16>, vector<8x96xf32> -> vector<8x96xf32>
    %36 = vector.broadcast %3 : vector<1x96xf32> to vector<8x96xf32>
    %37 = arith.addf %35, %36 : vector<8x96xf32>
    %38 = vector.extract_strided_slice %37 {offsets = [0, 0], sizes = [8, 32], strides = [1, 1]} : vector<8x96xf32> to vector<8x32xf32>
    %39 = vector.extract_strided_slice %38 {offsets = [0, 0], sizes = [8, 8], strides = [1, 1]} : vector<8x32xf32> to vector<8x8xf32>
    %40 = vector.extract_strided_slice %38 {offsets = [0, 8], sizes = [8, 8], strides = [1, 1]} : vector<8x32xf32> to vector<8x8xf32>
    %41 = vector.extract_strided_slice %38 {offsets = [0, 16], sizes = [8, 8], strides = [1, 1]} : vector<8x32xf32> to vector<8x8xf32>
    %42 = vector.extract_strided_slice %38 {offsets = [0, 24], sizes = [8, 8], strides = [1, 1]} : vector<8x32xf32> to vector<8x8xf32>
    %43 = vector.shape_cast %39 : vector<8x8xf32> to vector<1x8x8xf32>
    %44 = vector.shape_cast %40 : vector<8x8xf32> to vector<1x8x8xf32>
    %45 = vector.shape_cast %41 : vector<8x8xf32> to vector<1x8x8xf32>
    %46 = vector.shape_cast %42 : vector<8x8xf32> to vector<1x8x8xf32>
    %47 = tpu.concatenate %43, %44, %45, %46 in 0 : vector<1x8x8xf32>, vector<1x8x8xf32>, vector<1x8x8xf32>, vector<1x8x8xf32> -> vector<4x8x8xf32>
    %48 = arith.truncf %47 : vector<4x8x8xf32> to vector<4x8x8xbf16>
    %49 = vector.extract_strided_slice %37 {offsets = [0, 32], sizes = [8, 32], strides = [1, 1]} : vector<8x96xf32> to vector<8x32xf32>
    %50 = vector.extract_strided_slice %49 {offsets = [0, 0], sizes = [8, 8], strides = [1, 1]} : vector<8x32xf32> to vector<8x8xf32>
    %51 = vector.extract_strided_slice %49 {offsets = [0, 8], sizes = [8, 8], strides = [1, 1]} : vector<8x32xf32> to vector<8x8xf32>
    %52 = vector.extract_strided_slice %49 {offsets = [0, 16], sizes = [8, 8], strides = [1, 1]} : vector<8x32xf32> to vector<8x8xf32>
    %53 = vector.extract_strided_slice %49 {offsets = [0, 24], sizes = [8, 8], strides = [1, 1]} : vector<8x32xf32> to vector<8x8xf32>
    %54 = vector.shape_cast %50 : vector<8x8xf32> to vector<1x8x8xf32>
    %55 = vector.shape_cast %51 : vector<8x8xf32> to vector<1x8x8xf32>
    %56 = vector.shape_cast %52 : vector<8x8xf32> to vector<1x8x8xf32>
    %57 = vector.shape_cast %53 : vector<8x8xf32> to vector<1x8x8xf32>
    %58 = tpu.concatenate %54, %55, %56, %57 in 0 : vector<1x8x8xf32>, vector<1x8x8xf32>, vector<1x8x8xf32>, vector<1x8x8xf32> -> vector<4x8x8xf32>
    %59 = arith.truncf %58 : vector<4x8x8xf32> to vector<4x8x8xbf16>
    %60 = vector.extract_strided_slice %37 {offsets = [0, 64], sizes = [8, 32], strides = [1, 1]} : vector<8x96xf32> to vector<8x32xf32>
    %61 = vector.extract_strided_slice %60 {offsets = [0, 0], sizes = [8, 8], strides = [1, 1]} : vector<8x32xf32> to vector<8x8xf32>
    %62 = vector.extract_strided_slice %60 {offsets = [0, 8], sizes = [8, 8], strides = [1, 1]} : vector<8x32xf32> to vector<8x8xf32>
    %63 = vector.extract_strided_slice %60 {offsets = [0, 16], sizes = [8, 8], strides = [1, 1]} : vector<8x32xf32> to vector<8x8xf32>
    %64 = vector.extract_strided_slice %60 {offsets = [0, 24], sizes = [8, 8], strides = [1, 1]} : vector<8x32xf32> to vector<8x8xf32>
    %65 = vector.shape_cast %61 : vector<8x8xf32> to vector<1x8x8xf32>
    %66 = vector.shape_cast %62 : vector<8x8xf32> to vector<1x8x8xf32>
    %67 = vector.shape_cast %63 : vector<8x8xf32> to vector<1x8x8xf32>
    %68 = vector.shape_cast %64 : vector<8x8xf32> to vector<1x8x8xf32>
    %69 = tpu.concatenate %65, %66, %67, %68 in 0 : vector<1x8x8xf32>, vector<1x8x8xf32>, vector<1x8x8xf32>, vector<1x8x8xf32> -> vector<4x8x8xf32>
    %70 = arith.truncf %69 : vector<4x8x8xf32> to vector<4x8x8xbf16>
    "tpu.trace_start"() <{level = 10 : i32, message = "nqd,nkd->nqk"}> : () -> ()
    %cst_31 = arith.constant dense<0.000000e+00> : vector<4x8x8xf32>
    %71 = tpu.matmul %48, %59, %cst_31 {dimension_numbers = #tpu.dot_dimension_numbers<[2], [2], [1], [1], [0, 0, 0, 1, 1, 1], [0], [0]>} : vector<4x8x8xbf16>, vector<4x8x8xbf16>, vector<4x8x8xf32> -> vector<4x8x8xf32>
    "tpu.trace_stop"() : () -> ()
    %cst_32 = arith.constant dense<0xFF800000> : vector<4x8xf32>
    %72 = vector.multi_reduction <maximumf>, %71, %cst_32 [2] : vector<4x8x8xf32> to vector<4x8xf32>
    %73 = vector.shape_cast %72 : vector<4x8xf32> to vector<4x8x1xf32>
    %74 = vector.broadcast %73 : vector<4x8x1xf32> to vector<4x8x8xf32>
    %75 = arith.subf %71, %74 : vector<4x8x8xf32>
    %76 = math.exp %75 : vector<4x8x8xf32>
    %cst_33 = arith.constant dense<0.000000e+00> : vector<4x8xf32>
    %77 = vector.multi_reduction <add>, %76, %cst_33 [2] : vector<4x8x8xf32> to vector<4x8xf32>
    %78 = vector.shape_cast %77 : vector<4x8xf32> to vector<4x8x1xf32>
    %79 = tpu.reciprocal %78 {approx = true} : vector<4x8x1xf32> -> vector<4x8x1xf32>
    %80 = vector.broadcast %79 : vector<4x8x1xf32> to vector<4x8x8xf32>
    %81 = arith.mulf %76, %80 : vector<4x8x8xf32>
    %82 = arith.truncf %81 : vector<4x8x8xf32> to vector<4x8x8xbf16>
    "tpu.trace_start"() <{level = 10 : i32, message = "nqk,nkd->nqd"}> : () -> ()
    %cst_34 = arith.constant dense<0.000000e+00> : vector<4x8x8xf32>
    %83 = tpu.matmul %82, %70, %cst_34 {dimension_numbers = #tpu.dot_dimension_numbers<[2], [1], [1], [2], [0, 0, 0, 1, 1, 2], [0], [0]>} : vector<4x8x8xbf16>, vector<4x8x8xbf16>, vector<4x8x8xf32> -> vector<4x8x8xf32>
    "tpu.trace_stop"() : () -> ()
    %84 = vector.extract_strided_slice %83 {offsets = [0, 0, 0], sizes = [1, 8, 8], strides = [1, 1, 1]} : vector<4x8x8xf32> to vector<1x8x8xf32>
    %85 = vector.shape_cast %84 : vector<1x8x8xf32> to vector<8x8xf32>
    %86 = vector.extract_strided_slice %83 {offsets = [1, 0, 0], sizes = [1, 8, 8], strides = [1, 1, 1]} : vector<4x8x8xf32> to vector<1x8x8xf32>
    %87 = vector.shape_cast %86 : vector<1x8x8xf32> to vector<8x8xf32>
    %88 = vector.extract_strided_slice %83 {offsets = [2, 0, 0], sizes = [1, 8, 8], strides = [1, 1, 1]} : vector<4x8x8xf32> to vector<1x8x8xf32>
    %89 = vector.shape_cast %88 : vector<1x8x8xf32> to vector<8x8xf32>
    %90 = vector.extract_strided_slice %83 {offsets = [3, 0, 0], sizes = [1, 8, 8], strides = [1, 1, 1]} : vector<4x8x8xf32> to vector<1x8x8xf32>
    %91 = vector.shape_cast %90 : vector<1x8x8xf32> to vector<8x8xf32>
    %92 = tpu.concatenate %85, %87, %89, %91 in 1 : vector<8x8xf32>, vector<8x8xf32>, vector<8x8xf32>, vector<8x8xf32> -> vector<8x32xf32>
    %93 = arith.truncf %92 : vector<8x32xf32> to vector<8x32xbf16>
    %cst_35 = arith.constant dense<0.000000e+00> : vector<8x32xf32>
    %94 = tpu.matmul %93, %4, %cst_35 {dimension_numbers = #tpu.dot_dimension_numbers<[1], [0], [0], [1], [0, 0, 1, 1], [], []>} : vector<8x32xbf16>, vector<32x32xbf16>, vector<8x32xf32> -> vector<8x32xf32>
    %95 = vector.broadcast %5 : vector<1x32xf32> to vector<8x32xf32>
    %96 = arith.addf %94, %95 : vector<8x32xf32>
    %97 = arith.addf %13, %96 : vector<8x32xf32>
    %cst_36 = arith.constant dense<0.000000e+00> : vector<8xf32>
    %98 = vector.multi_reduction <add>, %97, %cst_36 [1] : vector<8x32xf32> to vector<8xf32>
    %99 = vector.shape_cast %98 : vector<8xf32> to vector<8x1xf32>
    %cst_37 = arith.constant 3.200000e+01 : f32
    %100 = vector.broadcast %cst_37 : f32 to vector<8x1xf32>
    %101 = arith.divf %99, %100 : vector<8x1xf32>
    %102 = vector.broadcast %101 : vector<8x1xf32> to vector<8x32xf32>
    %103 = arith.subf %97, %102 : vector<8x32xf32>
    %104 = arith.mulf %103, %103 : vector<8x32xf32>
    %cst_38 = arith.constant dense<0.000000e+00> : vector<8xf32>
    %105 = vector.multi_reduction <add>, %104, %cst_38 [1] : vector<8x32xf32> to vector<8xf32>
    %106 = vector.shape_cast %105 : vector<8xf32> to vector<8x1xf32>
    %cst_39 = arith.constant 3.200000e+01 : f32
    %107 = vector.broadcast %cst_39 : f32 to vector<8x1xf32>
    %108 = arith.divf %106, %107 : vector<8x1xf32>
    %cst_40 = arith.constant 9.99999974E-6 : f32
    %109 = vector.broadcast %cst_40 : f32 to vector<8x1xf32>
    %110 = arith.addf %108, %109 : vector<8x1xf32>
    %111 = math.rsqrt %110 : vector<8x1xf32>
    %112 = vector.broadcast %111 : vector<8x1xf32> to vector<8x32xf32>
    %113 = arith.mulf %103, %112 : vector<8x32xf32>
    %114 = vector.broadcast %6 : vector<1x32xf32> to vector<8x32xf32>
    %115 = arith.mulf %113, %114 : vector<8x32xf32>
    %116 = vector.broadcast %7 : vector<1x32xf32> to vector<8x32xf32>
    %117 = arith.addf %115, %116 : vector<8x32xf32>
    %118 = arith.truncf %117 : vector<8x32xf32> to vector<8x32xbf16>
    %cst_41 = arith.constant dense<0.000000e+00> : vector<8x128xf32>
    %119 = tpu.matmul %118, %8, %cst_41 {dimension_numbers = #tpu.dot_dimension_numbers<[1], [0], [0], [1], [0, 0, 1, 1], [], []>} : vector<8x32xbf16>, vector<32x128xbf16>, vector<8x128xf32> -> vector<8x128xf32>
    %120 = vector.broadcast %9 : vector<1x128xf32> to vector<8x128xf32>
    %121 = arith.addf %119, %120 : vector<8x128xf32>
    %cst_42 = arith.constant 5.000000e-01 : f32
    %122 = vector.broadcast %cst_42 : f32 to vector<8x128xf32>
    %123 = arith.mulf %122, %121 : vector<8x128xf32>
    %cst_43 = arith.constant 0.707106769 : f32
    %124 = vector.broadcast %cst_43 : f32 to vector<8x128xf32>
    %125 = arith.mulf %121, %124 : vector<8x128xf32>
    %126 = math.erf %125 : vector<8x128xf32>
    %cst_44 = arith.constant 1.000000e+00 : f32
    %127 = vector.broadcast %cst_44 : f32 to vector<8x128xf32>
    %128 = arith.addf %127, %126 : vector<8x128xf32>
    %129 = arith.mulf %123, %128 : vector<8x128xf32>
    %130 = arith.truncf %129 : vector<8x128xf32> to vector<8x128xbf16>
    %cst_45 = arith.constant dense<0.000000e+00> : vector<8x32xf32>
    %131 = tpu.matmul %130, %10, %cst_45 {dimension_numbers = #tpu.dot_dimension_numbers<[1], [0], [0], [1], [0, 0, 1, 1], [], []>} : vector<8x128xbf16>, vector<128x32xbf16>, vector<8x32xf32> -> vector<8x32xf32>
    %132 = vector.broadcast %11 : vector<1x32xf32> to vector<8x32xf32>
    %133 = arith.addf %131, %132 : vector<8x32xf32>
    %134 = arith.addf %97, %133 : vector<8x32xf32>
    %c0_46 = arith.constant 0 : index
    %c0_47 = arith.constant 0 : index
    %c0_48 = arith.constant 0 : index
    %135 = vector.load %arg14[%c0_46, %c0_47, %c0_48] : memref<1x8x32xf32, #tpu.memory_space<vmem>>, vector<1x8x32xf32>
    %136 = vector.shape_cast %135 : vector<1x8x32xf32> to vector<8x32xf32>
    %137 = vector.shape_cast %134 : vector<8x32xf32> to vector<1x8x32xf32>
    tpu.vector_store %arg14[%c0_46, %c0_47, %c0_48], %137 {strides = array<i32>} : memref<1x8x32xf32, #tpu.memory_space<vmem>>, vector<1x8x32xf32>,
    return
  }
  func.func @transform_0(%arg0: i32) -> (i32, i32, i32) {
    %c0_i32 = arith.constant 0 : i32
    %c0_i32_0 = arith.constant 0 : i32
    %c0_i32_1 = arith.constant 0 : i32
    return %arg0, %c0_i32, %c0_i32_0 : i32, i32, i32
  }
  func.func @transform_1(%arg0: i32) -> (i32, i32) {
    %c0_i32 = arith.constant 0 : i32
    %c0_i32_0 = arith.constant 0 : i32
    %c0_i32_1 = arith.constant 0 : i32
    return %c0_i32, %c0_i32_0 : i32, i32
  }
  func.func @transform_2(%arg0: i32) -> (i32, i32) {
    %c0_i32 = arith.constant 0 : i32
    %c0_i32_0 = arith.constant 0 : i32
    %c0_i32_1 = arith.constant 0 : i32
    return %c0_i32, %c0_i32_0 : i32, i32
  }
  func.func @transform_3(%arg0: i32) -> (i32, i32) {
    %c0_i32 = arith.constant 0 : i32
    %c0_i32_0 = arith.constant 0 : i32
    %c0_i32_1 = arith.constant 0 : i32
    return %c0_i32, %c0_i32_0 : i32, i32
  }
  func.func @transform_4(%arg0: i32) -> (i32, i32) {
    %c0_i32 = arith.constant 0 : i32
    %c0_i32_0 = arith.constant 0 : i32
    %c0_i32_1 = arith.constant 0 : i32
    return %c0_i32, %c0_i32_0 : i32, i32
  }
  func.func @transform_5(%arg0: i32) -> (i32, i32) {
    %c0_i32 = arith.constant 0 : i32
    %c0_i32_0 = arith.constant 0 : i32
    %c0_i32_1 = arith.constant 0 : i32
    return %c0_i32, %c0_i32_0 : i32, i32
  }
  func.func @transform_6(%arg0: i32) -> (i32, i32) {
    %c0_i32 = arith.constant 0 : i32
    %c0_i32_0 = arith.constant 0 : i32
    %c0_i32_1 = arith.constant 0 : i32
    return %c0_i32, %c0_i32_0 : i32, i32
  }
  func.func @transform_7(%arg0: i32) -> (i32, i32) {
    %c0_i32 = arith.constant 0 : i32
    %c0_i32_0 = arith.constant 0 : i32
    %c0_i32_1 = arith.constant 0 : i32
    return %c0_i32, %c0_i32_0 : i32, i32
  }
  func.func @transform_8(%arg0: i32) -> (i32, i32) {
    %c0_i32 = arith.constant 0 : i32
    %c0_i32_0 = arith.constant 0 : i32
    %c0_i32_1 = arith.constant 0 : i32
    return %c0_i32, %c0_i32_0 : i32, i32
  }
  func.func @transform_9(%arg0: i32) -> (i32, i32) {
    %c0_i32 = arith.constant 0 : i32
    %c0_i32_0 = arith.constant 0 : i32
    %c0_i32_1 = arith.constant 0 : i32
    return %c0_i32, %c0_i32_0 : i32, i32
  }
  func.func @transform_10(%arg0: i32) -> (i32, i32) {
    %c0_i32 = arith.constant 0 : i32
    %c0_i32_0 = arith.constant 0 : i32
    %c0_i32_1 = arith.constant 0 : i32
    return %c0_i32, %c0_i32_0 : i32, i32
  }
  func.func @transform_11(%arg0: i32) -> (i32, i32) {
    %c0_i32 = arith.constant 0 : i32
    %c0_i32_0 = arith.constant 0 : i32
    %c0_i32_1 = arith.constant 0 : i32
    return %c0_i32, %c0_i32_0 : i32, i32
  }
  func.func @transform_12(%arg0: i32) -> (i32, i32) {
    %c0_i32 = arith.constant 0 : i32
    %c0_i32_0 = arith.constant 0 : i32
    %c0_i32_1 = arith.constant 0 : i32
    return %c0_i32, %c0_i32_0 : i32, i32
  }
  func.func @transform_13(%arg0: i32) -> (i32, i32, i32) {
    %c0_i32 = arith.constant 0 : i32
    %c0_i32_0 = arith.constant 0 : i32
    %c0_i32_1 = arith.constant 0 : i32
    return %arg0, %c0_i32, %c0_i32_0 : i32, i32, i32
  }
}

</mosaic_0001>

<bundles_post_ra>
// kernel: tpu_custom_call.1
= control target key start
LH: loop header
LB: loop body
LE: loop exit
PB: predicated region body
PF: predicated region fallthrough
CT: control target
= control target key end

     0   :  { %vm84_vm0 = vcmask 261120   ;;  %s2832_s0 = inlined_call_operand.vmem [shape: f32[16,32], index: 0, kind: input, shape index: {}]   ;;  %s2833_s1 = inlined_call_operand.vmem [shape: f32[1,32], index: 1, kind: input, shape index: {}]   ;;  %s2834_s2 = inlined_call_operand.vmem [shape: f32[1,32], index: 2, kind: input, shape index: {}]   ;;  %s2835_s3 = inlined_call_operand.vmem [shape: bf16[32,96], index: 3, kind: input, shape index: {}]   ;;  %s2836_s4 = inlined_call_operand.vmem [shape: f32[1,96], index: 4, kind: input, shape index: {}]   ;;  %s2837_s5 = inlined_call_operand.vmem [shape: bf16[32,32], index: 5, kind: input, shape index: {}]   ;;  %s2838_s6 = inlined_call_operand.vmem [shape: f32[1,32], index: 6, kind: input, shape index: {}]   ;;  %s2839_s7 = inlined_call_operand.vmem [shape: f32[1,32], index: 7, kind: input, shape index: {}]   ;;  %s2840_s8 = inlined_call_operand.vmem [shape: f32[1,32], index: 8, kind: input, shape index: {}]   ;;  %s2841_s9 = inlined_call_operand.vmem [shape: bf16[32,128], index: 9, kind: input, shape index: {}]   ;;  %s2842_s10 = inlined_call_operand.vmem [shape: f32[1,128], index: 10, kind: input, shape index: {}]   ;;  %s2843_s11 = inlined_call_operand.vmem [shape: bf16[128,32], index: 11, kind: input, shape index: {}]   ;;  %s2844_s12 = inlined_call_operand.vmem [shape: f32[1,32], index: 12, kind: input, shape index: {}]   ;;  %s2845_s13 = inlined_call_operand.hbm [shape: f32[16,32], index: 13, kind: output, shape index: {}]  }
   0x1   :  { %v82_v0 = vld [vmem:[%s2832_s0] sm:$0xff] }
   0x2   :  { %v85_v1 = vsel %vm84_vm0, %v82_v0, 0.0 }
   0x3   :  { %86 = vadd.xlane.f32.xlu0 %v85_v1 }
   0x4   :  { %18 = vsyncpa [#allocation3], 0  ;;  %v83_v2 = vld [vmem:[%s2832_s0 + $0x8] sm:$0xff]  ;;  %v2144_v4 = vmov 32.0   ;;  %v1965_v23 = vld [vmem:[%s2835_s3] sm:$0xff]  ;;  %s2147_s21 = smov 120  }
   0x5   :  { %v88_v3 = vsel %vm84_vm0, %v83_v2, 0.0  ;;  %2070 = vrcp.f32 %v2144_v4  ;;  %v1966_v21 = vld [vmem:[%s2835_s3 + $0x8] sm:$0xff]  ;;  %v2062_v42 = vld [vmem:[%s2833_s1] ss:$0 sm:$0xff]  ;;  %s2145_s1 = smov 96   ;;  %s2148_s22 = smov 112  }
   0x6   :  { %171 = vmatpush.bf16.msra.mxu0 %v1966_v21  ;;  %v2063_v47 = vld [vmem:[%s2834_s2] ss:$0 sm:$0xff]  ;;  %s2146_s2 = smov 104   ;;  %vm200_vm8 = vcmask 1047556   ;;  %vm932_vm9 = vcmask 64512   ;;  %vm1184_vm10 = vcmask 1043456  }
   0x7   :  { %v2064_v53 = vld [vmem:[%s2836_s4] ss:$0 sm:$0xff]  ;;  %s2151_s4 = smov 64   ;;  %s2152_s23 = smov 24   ;;  %vm1584_vm11 = vcmask 130048   ;;  %vm1587_vm12 = vcmask 195584  }
   0x8   :  { %s2153_s24 = smov 16   ;;  %s2154_s25 = smov 8  }
   0x9   :  { %s1876_s17 = sshll.u32 %s2845_s13, 4  ;;  %s2155_s18 = smov [#allocation2]   ;;  %s1877_s17 = int_to_ptr.hbm [resolvable:$true] %s1876_s17 }
   0xa   :  { %172 = vmatpush.bf16.msra.mxu0 %v1965_v23 }
   0xb   :  { %89 = vadd.xlane.f32.xlu0 %v88_v3  ;;  %v2071_v5 = vpop.eup %2070 }
   0xc   :  { %v92_v6 = vmul.f32 32.0, %v2071_v5  ;;  %vm96_vm1 = vweird.f32 %v2071_v5 }
   0xe   :  { %v93_v7 = vsub.f32 1.0, %v92_v6 }
  0x10   :  { %v94_v8 = vmul.f32 %v2071_v5, %v93_v7 }
  0x12   :  { %v95_v9 = vadd.f32 %v2071_v5, %v94_v8 }
  0x14   :  { %v2235_v10 = vsel %vm96_vm1, %v2071_v5, %v95_v9  ;;  %v2150_v9 = vmov 1934713408  }
  0x76   :  { %v87_v11 = vpop.xlane.xlu0 %86 }
  0x77   :  { %v98_v12 = vmul.f32 %v2235_v10, %v87_v11  ;;  %v229_v11 = vunpack.c.l.s4 %v2150_v9 }
  0x79   :  { %v100_v13 = vsub.f32 %v82_v0, %v98_v12  ;;  %v2149_v0 = vmov 1983009808  }
  0x7a   :  { %v205_v1 = vunpack.c.l.s4 %v2149_v0 }
  0x7b   :  { %v102_v14 = vmul.f32 %v100_v13, %v100_v13 }
  0x7c   :  { %v2278_v4 = vunpack.c.0.s8 %v205_v1 }
  0x7d   :  { %v104_v15 = vsel %vm84_vm0, %v102_v14, 0.0 }
  0x7e   :  { %105 = vadd.xlane.f32.xlu1 %v104_v15  ;;  %v90_v16 = vpop.xlane.xlu0 %89 }
  0x7f   :  { %v99_v17 = vmul.f32 %v2235_v10, %v90_v16 }
  0x81   :  { %v101_v18 = vsub.f32 %v83_v2, %v99_v17  ;;  %v2288_v17 = vunpack.c.0.s8 %v229_v11 }
  0x83   :  { %v103_v19 = vmul.f32 %v101_v18, %v101_v18 }
  0x85   :  { %v107_v20 = vsel %vm84_vm0, %v103_v19, 0.0 }
  0x86   :  { %108 = vadd.xlane.f32.xlu1 %v107_v20 }
  0xf1   :  { %v106_v22 = vpop.xlane.xlu1 %105 }
  0xf2   :  { %v110_v24 = vmul.f32 %v106_v22, %v2235_v10 }
  0xf4   :  { %v112_v25 = vadd.f32 1e-05, %v110_v24 }
  0xf6   :  { %2072 = vrsqrt.f32 %v112_v25  ;;  %vm120_vm3 = vweird.f32 %v112_v25 }
  0xf9   :  { %v109_v26 = vpop.xlane.xlu1 %108 }
  0xfa   :  { %v111_v27 = vmul.f32 %v109_v26, %v2235_v10 }
  0xfc   :  { %v2073_v28 = vpop.eup %2072  ;;  %v113_v29 = vadd.f32 1e-05, %v111_v27 }
  0xfd   :  { %v115_v30 = vmul.f32 %v2073_v28, %v112_v25  ;;  %vm121_vm2 = vweird.f32 %v2073_v28 }
  0xfe   :  { %2074 = vrsqrt.f32 %v113_v29  ;;  %vm122_vm4 = vmor %vm120_vm3, %vm121_vm2  ;;  %vm130_vm6 = vweird.f32 %v113_v29 }
  0xff   :  { %v116_v31 = vmul.f32 %v2073_v28, %v115_v30 }
 0x101   :  { %v117_v32 = vmul.f32 0.5, %v116_v31 }
 0x103   :  { %v118_v33 = vsub.f32 1.5, %v117_v32 }
 0x104   :  { %v2075_v34 = vpop.eup %2074 }
 0x105   :  { %v119_v35 = vmul.f32 %v2073_v28, %v118_v33  ;;  %v125_v36 = vmul.f32 %v2075_v34, %v113_v29  ;;  %vm131_vm5 = vweird.f32 %v2075_v34 }
 0x106   :  { %vm132_vm7 = vmor %vm130_vm6, %vm131_vm5 }
 0x107   :  { %v126_v37 = vmul.f32 %v2075_v34, %v125_v36  ;;  %v123_v38 = vsel %vm122_vm4, %v2073_v28, %v119_v35 }
 0x108   :  { %v134_v41 = vmul.f32 %v123_v38, %v100_v13 }
 0x109   :  { %v127_v39 = vmul.f32 0.5, %v126_v37 }
 0x10a   :  { %v139_v46 = vmul.f32 %v2062_v42, %v134_v41 }
 0x10b   :  { %v128_v40 = vsub.f32 1.5, %v127_v39 }
 0x10c   :  { %v144_v49 = vadd.f32 %v2063_v47, %v139_v46 }
 0x10d   :  { %v129_v43 = vmul.f32 %v2075_v34, %v128_v40 }
 0x10f   :  { %v133_v44 = vsel %vm132_vm7, %v2075_v34, %v129_v43 }
 0x110   :  { %v135_v45 = vmul.f32 %v133_v44, %v101_v18 }
 0x112   :  { %v140_v48 = vmul.f32 %v2062_v42, %v135_v45 }
 0x114   :  { %v145_v50 = vadd.f32 %v2063_v47, %v140_v48 }
 0x116   :  { %v146_v51 = vpack.c.bf16 %v145_v50, %v144_v49 }
 0x118   :  { %1896 = vmatmul.msk.bf16.vlgmr.msra.gmra.mxu0 %vm84_vm0, %v146_v51 }
 0x195   :  { %v174_v52 = vpop.f32.mrf.mxu0 }
 0x196   :  { %v175_v55 = vadd.f32 %v2064_v53, %v174_v52 }
 0x198   :  { %v202_v3 = vrot.slane %v175_v55, 4 }
 0x19d   :  { %v176_v54 = vpop.f32.mrf.mxu0 }
 0x19e   :  { %v177_v56 = vadd.f32 %v2064_v53, %v176_v54 }
 0x1a0   :  { %v2259_v57 = vpack.i.bf16 %v177_v56, %v175_v55  ;;  %v258_v2 = vrot.slane %v177_v56, 4 }
 0x1a2   :  { %2008 = vrot.lane.b32.xlu1 %v2259_v57, %s2145_s1  ;;  %2003 = vrot.lane.b32.xlu0 %v2259_v57, %s2146_s2 }
 0x1a3   :  { %1993 = vrot.lane.b32.xlu2 %v2259_v57, %s2147_s21 }
 0x1ab   :  { %1998 = vrot.lane.b32.xlu2 %v2259_v57, %s2148_s22 }
 0x1fd   :  { %v2266_v58 = vpop.permute.xlu2 %1993 }
 0x1fe   :  { %v1996_v59 = vunpack.i.h.bf16 %v2266_v58  ;;  %v1995_v60 = vunpack.i.l.bf16 %v2266_v58  ;;  %2013 = vrot.lane.b32.xlu2 %v2266_v58, %s2145_s1 }
 0x200   :  { %v270_v20 = vrot.slane %v1996_v59, 4  ;;  %v214_v21 = vrot.slane %v1995_v60, 4 }
 0x205   :  { %v2272_v61 = vpop.permute.xlu2 %1998 }
 0x206   :  { %v2001_v62 = vunpack.i.h.bf16 %v2272_v61  ;;  %v2000_v63 = vunpack.i.l.bf16 %v2272_v61  ;;  %2018 = vrot.lane.b32.xlu2 %v2272_v61, %s2145_s1 }
 0x208   :  { %v256_v5 = vrot.slane %v2001_v62, 4  ;;  %v199_v6 = vrot.slane %v2000_v63, 4  ;;  %v259_v7 = vsel %vm200_vm8, %v2001_v62, %v258_v2  ;;  %v203_v8 = vsel %vm200_vm8, %v2000_v63, %v202_v3 }
 0x209   :  { %v267_v13 = vperm.slane %v259_v7, %v2278_v4  ;;  %v211_v15 = vperm.slane %v203_v8, %v2278_v4 }
 0x20a   :  { %v257_v12 = vsel %vm200_vm8, %v256_v5, %v177_v56  ;;  %v201_v14 = vsel %vm200_vm8, %v199_v6, %v175_v55 }
 0x20b   :  { %v263_v22 = vperm.slane %v257_v12, %v2278_v4  ;;  %v207_v23 = vperm.slane %v201_v14, %v2278_v4  ;;  %v294_v24 = vrot.slane %v267_v13, 4  ;;  %v238_v25 = vrot.slane %v211_v15, 4 }
 0x20d   :  { %v282_v34 = vrot.slane %v263_v22, 4  ;;  %v226_v35 = vrot.slane %v207_v23, 4 }
 0x214   :  { %v2286_v16 = vpop.permute.xlu0 %2003 }
 0x215   :  { %v2006_v18 = vunpack.i.h.bf16 %v2286_v16  ;;  %v2005_v19 = vunpack.i.l.bf16 %v2286_v16  ;;  %2023 = vrot.lane.b32.xlu2 %v2286_v16, %s2145_s1 }
 0x217   :  { %v268_v26 = vrot.slane %v2006_v18, 4  ;;  %v212_v27 = vrot.slane %v2005_v19, 4  ;;  %v215_v28 = vsel %vm200_vm8, %v2005_v19, %v214_v21  ;;  %v271_v29 = vsel %vm200_vm8, %v2006_v18, %v270_v20 }
 0x218   :  { %v223_v31 = vperm.slane %v215_v28, %v2278_v4  ;;  %v279_v33 = vperm.slane %v271_v29, %v2278_v4 }
 0x219   :  { %v213_v30 = vsel %vm200_vm8, %v212_v27, %v1995_v60  ;;  %v269_v32 = vsel %vm200_vm8, %v268_v26, %v1996_v59 }
 0x21a   :  { %v219_v36 = vperm.slane %v213_v30, %v2278_v4  ;;  %v275_v37 = vperm.slane %v269_v32, %v2278_v4  ;;  %v236_v38 = vrot.slane %v223_v31, 4  ;;  %v239_v39 = vsel %vm200_vm8, %v223_v31, %v238_v25 }
 0x21b   :  { %v292_v40 = vrot.slane %v279_v33, 4  ;;  %v295_v41 = vsel %vm200_vm8, %v279_v33, %v294_v24  ;;  %v247_v44 = vperm.slane %v239_v39, %v2288_v17 }
 0x21c   :  { %v224_v42 = vrot.slane %v219_v36, 4  ;;  %v227_v43 = vsel %vm200_vm8, %v219_v36, %v226_v35  ;;  %v280_v45 = vrot.slane %v275_v37, 4  ;;  %v237_v47 = vsel %vm200_vm8, %v236_v38, %v211_v15 }
 0x21d   :  { %v235_v46 = vperm.slane %v227_v43, %v2288_v17  ;;  %v283_v48 = vsel %vm200_vm8, %v275_v37, %v282_v34  ;;  %v293_v49 = vsel %vm200_vm8, %v292_v40, %v267_v13  ;;  %v243_v50 = vperm.slane %v237_v47, %v2288_v17 }
 0x21e   :  { %v254_v51 = vrot.slane %v247_v44, 4  ;;  %v281_v52 = vsel %vm200_vm8, %v280_v45, %v263_v22  ;;  %v291_v53 = vperm.slane %v283_v48, %v2288_v17  ;;  %v299_v55 = vperm.slane %v293_v49, %v2288_v17 }
 0x21f   :  { %v250_v54 = vrot.slane %v235_v46, 4  ;;  %v303_v56 = vperm.slane %v295_v41, %v2288_v17  ;;  %v225_v59 = vsel %vm200_vm8, %v224_v42, %v207_v23  ;;  %v252_v60 = vrot.slane %v243_v50, 4 }
 0x220   :  { %v255_v62 = vsel %vm200_vm8, 0.0, %v254_v51  ;;  %v306_v63 = vrot.slane %v291_v53, 4  ;;  %v231_v0 = vperm.slane %v225_v59, %v2288_v17  ;;  %v308_v1 = vrot.slane %v299_v55, 4 }
 0x221   :  { %v310_v2 = vrot.slane %v303_v56, 4  ;;  %v370_v3 = vrot.slane %v255_v62, 4  ;;  %v287_v5 = vperm.slane %v281_v52, %v2288_v17  ;;  %v253_v6 = vsel %vm200_vm8, 0.0, %v252_v60 }
 0x222   :  { %v307_v7 = vsel %vm200_vm8, 0.0, %v306_v63  ;;  %v248_v8 = vrot.slane %v231_v0, 4  ;;  %v312_v9 = vsel %vm200_vm8, %v252_v60, %v231_v0  ;;  %v309_v11 = vsel %vm200_vm8, 0.0, %v308_v1 }
 0x223   :  { %v311_v12 = vsel %vm200_vm8, 0.0, %v310_v2  ;;  %v364_v13 = vrot.slane %v253_v6, 4  ;;  %v304_v14 = vrot.slane %v287_v5, 4  ;;  %v376_v15 = vrot.slane %v309_v11, 4 }
 0x224   :  { %v382_v18 = vrot.slane %v311_v12, 4  ;;  %v316_v19 = vperm.slane %v312_v9, %v2278_v4  ;;  %v317_v20 = vsel %vm200_vm8, %v254_v51, %v235_v46  ;;  %v322_v22 = vsel %vm200_vm8, %v308_v1, %v287_v5 }
 0x225   :  { %v321_v21 = vperm.slane %v317_v20, %v2278_v4  ;;  %v327_v23 = vsel %vm200_vm8, %v310_v2, %v291_v53  ;;  %v249_v24 = vsel %vm200_vm8, 0.0, %v248_v8  ;;  %v326_v25 = vperm.slane %v322_v22, %v2278_v4  ;;  %v2009_v22 = vpop.permute.xlu1 %2008 }
 0x226   :  { %v331_v26 = vperm.slane %v327_v23, %v2278_v4  ;;  %v334_v27 = vrot.slane %v316_v19, 4  ;;  %v251_v28 = vsel %vm200_vm8, 0.0, %v250_v54  ;;  %v305_v30 = vsel %vm200_vm8, 0.0, %v304_v14 }
 0x227   :  { %v332_v29 = vrot.slane %v321_v21, 4  ;;  %v365_v31 = vsel %vm200_vm8, %v364_v13, %v249_v24  ;;  %v371_v32 = vsel %vm200_vm8, %v370_v3, %v251_v28  ;;  %v346_v35 = vrot.slane %v326_v25, 4 }
 0x228   :  { %v344_v33 = vrot.slane %v331_v26, 4  ;;  %v335_v34 = vsel %vm200_vm8, %v321_v21, %v334_v27  ;;  %v369_v36 = vperm.slane %v365_v31, %v2278_v4  ;;  %v375_v39 = vperm.slane %v371_v32, %v2278_v4 }
 0x229   :  { %v333_v37 = vsel %vm200_vm8, %v332_v29, %v316_v19  ;;  %v343_v38 = vperm.slane %v335_v34, %v2288_v17  ;;  %v377_v40 = vsel %vm200_vm8, %v376_v15, %v305_v30  ;;  %v347_v43 = vsel %vm200_vm8, %v331_v26, %v346_v35 }
 0x22a   :  { %v339_v41 = vperm.slane %v333_v37, %v2288_v17  ;;  %v345_v42 = vsel %vm200_vm8, %v344_v33, %v326_v25  ;;  %v381_v44 = vperm.slane %v377_v40, %v2278_v4  ;;  %v355_v46 = vperm.slane %v347_v43, %v2288_v17 }
 0x22b   :  { %v351_v45 = vperm.slane %v345_v42, %v2288_v17  ;;  %v362_v47 = vrot.slane %v343_v38, 4  ;;  %v383_v48 = vsel %vm200_vm8, %v382_v18, %v307_v7  ;;  %v388_v51 = vrot.slane %v375_v39, 4 }
 0x22c   :  { %v358_v49 = vrot.slane %v339_v41, 4  ;;  %v387_v50 = vperm.slane %v383_v48, %v2278_v4  ;;  %v390_v52 = vrot.slane %v369_v36, 4  ;;  %v360_v54 = vrot.slane %v355_v46, 4 }
 0x22d   :  { %v356_v53 = vrot.slane %v351_v45, 4  ;;  %v2353_v55 = vsel %vm200_vm8, %v355_v46, %v362_v47  ;;  %v402_v56 = vrot.slane %v381_v44, 4  ;;  %v389_v60 = vsel %vm200_vm8, %v388_v51, %v369_v36 }
 0x22e   :  { %v2356_v59 = vsel %vm200_vm8, %v351_v45, %v358_v49  ;;  %v400_v62 = vrot.slane %v387_v50, 4  ;;  %v2363_v0 = vsel %vm200_vm8, %v360_v54, %v343_v38  ;;  %v395_v1 = vperm.slane %v389_v60, %v2288_v17 }
 0x22f   :  { %v2360_v63 = vsel %vm200_vm8, %v356_v53, %v339_v41  ;;  %v391_v3 = vsel %vm200_vm8, %v375_v39, %v390_v52  ;;  %v403_v8 = vsel %vm200_vm8, %v387_v50, %v402_v56  ;;  %v2010_v24 = vunpack.i.l.bf16 %v2009_v22 }
 0x230   :  { %v401_v2 = vsel %vm200_vm8, %v400_v62, %v381_v44  ;;  %v414_v6 = vrot.slane %v395_v1, 4  ;;  %v399_v7 = vperm.slane %v391_v3, %v2288_v17  ;;  %v411_v9 = vperm.slane %v403_v8, %v2288_v17 }
 0x231   :  { %v407_v5 = vperm.slane %v401_v2, %v2288_v17  ;;  %v2011_v26 = vunpack.i.h.bf16 %v2009_v22  ;;  %v454_v28 = vrot.slane %v2010_v24, 4 }
 0x232   :  { %v418_v13 = vrot.slane %v399_v7, 4  ;;  %v416_v14 = vrot.slane %v411_v9, 4 }
 0x233   :  { %v412_v11 = vrot.slane %v407_v5, 4  ;;  %v2373_v12 = vsel %vm200_vm8, %v407_v5, %v414_v6  ;;  %v510_v30 = vrot.slane %v2011_v26, 4 }
 0x234   :  { %v2379_v18 = vsel %vm200_vm8, %v411_v9, %v418_v13  ;;  %v2382_v19 = vsel %vm200_vm8, %v416_v14, %v399_v7 }
 0x235   :  { %v2376_v15 = vsel %vm200_vm8, %v412_v11, %v395_v1 }
 0x258   :  { %v2014_v20 = vpop.permute.xlu2 %2013 }
 0x259   :  { %v2016_v31 = vunpack.i.h.bf16 %v2014_v20  ;;  %v2015_v32 = vunpack.i.l.bf16 %v2014_v20 }
 0x25b   :  { %v522_v37 = vrot.slane %v2016_v31, 4  ;;  %v466_v38 = vrot.slane %v2015_v32, 4 }
 0x260   :  { %v2019_v21 = vpop.permute.xlu2 %2018 }
 0x261   :  { %v2020_v23 = vunpack.i.l.bf16 %v2019_v21  ;;  %v2021_v25 = vunpack.i.h.bf16 %v2019_v21 }
 0x263   :  { %v452_v27 = vrot.slane %v2020_v23, 4  ;;  %v508_v29 = vrot.slane %v2021_v25, 4  ;;  %v455_v33 = vsel %vm200_vm8, %v2020_v23, %v454_v28  ;;  %v511_v34 = vsel %vm200_vm8, %v2021_v25, %v510_v30 }
 0x264   :  { %v463_v39 = vperm.slane %v455_v33, %v2278_v4  ;;  %v519_v41 = vperm.slane %v511_v34, %v2278_v4 }
 0x265   :  { %v453_v35 = vsel %vm200_vm8, %v452_v27, %v2010_v24  ;;  %v509_v36 = vsel %vm200_vm8, %v508_v29, %v2011_v26 }
 0x266   :  { %v459_v42 = vperm.slane %v453_v35, %v2278_v4  ;;  %v515_v45 = vperm.slane %v509_v36, %v2278_v4  ;;  %v490_v50 = vrot.slane %v463_v39, 4  ;;  %v546_v53 = vrot.slane %v519_v41, 4 }
 0x268   :  { %v478_v54 = vrot.slane %v459_v42, 4  ;;  %v534_v5 = vrot.slane %v515_v45, 4 }
 0x26f   :  { %v2024_v40 = vpop.permute.xlu2 %2023 }
 0x270   :  { %v2026_v43 = vunpack.i.h.bf16 %v2024_v40  ;;  %v2025_v44 = vunpack.i.l.bf16 %v2024_v40 }
 0x272   :  { %v520_v46 = vrot.slane %v2026_v43, 4  ;;  %v464_v47 = vrot.slane %v2025_v44, 4  ;;  %v467_v48 = vsel %vm200_vm8, %v2025_v44, %v466_v38  ;;  %v523_v49 = vsel %vm200_vm8, %v2026_v43, %v522_v37 }
 0x273   :  { %v475_v51 = vperm.slane %v467_v48, %v2278_v4  ;;  %v531_v52 = vperm.slane %v523_v49, %v2278_v4 }
 0x274   :  { %v465_v56 = vsel %vm200_vm8, %v464_v47, %v2015_v32  ;;  %v521_v60 = vsel %vm200_vm8, %v520_v46, %v2016_v31 }
 0x275   :  { %v471_v62 = vperm.slane %v465_v56, %v2278_v4  ;;  %v488_v1 = vrot.slane %v475_v51, 4  ;;  %v491_v2 = vsel %vm200_vm8, %v475_v51, %v490_v50  ;;  %v527_v3 = vperm.slane %v521_v60, %v2278_v4 }
 0x276   :  { %v499_v6 = vperm.slane %v491_v2, %v2288_v17  ;;  %v544_v7 = vrot.slane %v531_v52, 4  ;;  %v547_v8 = vsel %vm200_vm8, %v531_v52, %v546_v53 }
 0x277   :  { %v476_v9 = vrot.slane %v471_v62, 4  ;;  %v479_v11 = vsel %vm200_vm8, %v471_v62, %v478_v54  ;;  %v489_v13 = vsel %vm200_vm8, %v488_v1, %v463_v39  ;;  %v532_v14 = vrot.slane %v527_v3, 4 }
 0x278   :  { %v487_v20 = vperm.slane %v479_v11, %v2288_v17  ;;  %v495_v21 = vperm.slane %v489_v13, %v2288_v17  ;;  %v506_v22 = vrot.slane %v499_v6, 4  ;;  %v535_v23 = vsel %vm200_vm8, %v527_v3, %v534_v5 }
 0x279   :  { %v477_v24 = vsel %vm200_vm8, %v476_v9, %v459_v42  ;;  %v533_v25 = vsel %vm200_vm8, %v532_v14, %v515_v45  ;;  %v543_v26 = vperm.slane %v535_v23, %v2288_v17  ;;  %v545_v27 = vsel %vm200_vm8, %v544_v7, %v519_v41 }
 0x27a   :  { %v483_v28 = vperm.slane %v477_v24, %v2288_v17  ;;  %v502_v29 = vrot.slane %v487_v20, 4  ;;  %v504_v30 = vrot.slane %v495_v21, 4  ;;  %v507_v31 = vsel %vm200_vm8, 0.0, %v506_v22 }
 0x27b   :  { %v539_v32 = vperm.slane %v533_v25, %v2288_v17  ;;  %v551_v33 = vperm.slane %v545_v27, %v2288_v17  ;;  %v555_v34 = vperm.slane %v547_v8, %v2288_v17  ;;  %v558_v35 = vrot.slane %v543_v26, 4 }
 0x27c   :  { %v505_v36 = vsel %vm200_vm8, 0.0, %v504_v30  ;;  %v622_v37 = vrot.slane %v507_v31, 4  ;;  %v564_v38 = vsel %vm200_vm8, %v504_v30, %v483_v28  ;;  %v569_v39 = vsel %vm200_vm8, %v506_v22, %v487_v20 }
 0x27d   :  { %v556_v40 = vrot.slane %v539_v32, 4  ;;  %v559_v41 = vsel %vm200_vm8, 0.0, %v558_v35  ;;  %v560_v42 = vrot.slane %v551_v33, 4  ;;  %v562_v43 = vrot.slane %v555_v34, 4 }
 0x27e   :  { %v616_v44 = vrot.slane %v505_v36, 4  ;;  %v568_v45 = vperm.slane %v564_v38, %v2278_v4  ;;  %v573_v46 = vperm.slane %v569_v39, %v2278_v4  ;;  %v500_v47 = vrot.slane %v483_v28, 4 }
 0x27f   :  { %v561_v48 = vsel %vm200_vm8, 0.0, %v560_v42  ;;  %v563_v49 = vsel %vm200_vm8, 0.0, %v562_v43  ;;  %v574_v50 = vsel %vm200_vm8, %v560_v42, %v539_v32  ;;  %v579_v51 = vsel %vm200_vm8, %v562_v43, %v543_v26 }
 0x280   :  { %v628_v52 = vrot.slane %v561_v48, 4  ;;  %v634_v53 = vrot.slane %v563_v49, 4  ;;  %v578_v54 = vperm.slane %v574_v50, %v2278_v4  ;;  %v583_v56 = vperm.slane %v579_v51, %v2278_v4 }
 0x281   :  { %v584_v60 = vrot.slane %v573_v46, 4  ;;  %v586_v62 = vrot.slane %v568_v45, 4  ;;  %v501_v1 = vsel %vm200_vm8, 0.0, %v500_v47  ;;  %v503_v2 = vsel %vm200_vm8, 0.0, %v502_v29 }
 0x282   :  { %v596_v3 = vrot.slane %v583_v56, 4  ;;  %v598_v5 = vrot.slane %v578_v54, 4  ;;  %v557_v6 = vsel %vm200_vm8, 0.0, %v556_v40  ;;  %v617_v7 = vsel %vm200_vm8, %v616_v44, %v501_v1 }
 0x283   :  { %v585_v8 = vsel %vm200_vm8, %v584_v60, %v568_v45  ;;  %v587_v9 = vsel %vm200_vm8, %v573_v46, %v586_v62  ;;  %v621_v11 = vperm.slane %v617_v7, %v2278_v4  ;;  %v623_v13 = vsel %vm200_vm8, %v622_v37, %v503_v2 }
 0x284   :  { %v591_v14 = vperm.slane %v585_v8, %v2288_v17  ;;  %v597_v20 = vsel %vm200_vm8, %v596_v3, %v578_v54  ;;  %v595_v21 = vperm.slane %v587_v9, %v2288_v17  ;;  %v599_v22 = vsel %vm200_vm8, %v583_v56, %v598_v5 }
 0x285   :  { %v603_v23 = vperm.slane %v597_v20, %v2288_v17  ;;  %v607_v24 = vperm.slane %v599_v22, %v2288_v17  ;;  %v627_v25 = vperm.slane %v623_v13, %v2278_v4  ;;  %v629_v26 = vsel %vm200_vm8, %v628_v52, %v557_v6 }
 0x286   :  { %v610_v27 = vrot.slane %v591_v14, 4  ;;  %v614_v28 = vrot.slane %v595_v21, 4  ;;  %v633_v29 = vperm.slane %v629_v26, %v2278_v4  ;;  %v635_v30 = vsel %vm200_vm8, %v634_v53, %v559_v41 }
 0x287   :  { %v608_v31 = vrot.slane %v603_v23, 4  ;;  %v612_v32 = vrot.slane %v607_v24, 4  ;;  %v639_v33 = vperm.slane %v635_v30, %v2278_v4  ;;  %v640_v34 = vrot.slane %v627_v25, 4 }
 0x288   :  { %v611_v35 = vsel %vm200_vm8, %v603_v23, %v610_v27  ;;  %v615_v36 = vsel %vm200_vm8, %v607_v24, %v614_v28  ;;  %v642_v37 = vrot.slane %v621_v11, 4  ;;  %v654_v38 = vrot.slane %v633_v29, 4 }
 0x289   :  { %v609_v39 = vsel %vm200_vm8, %v608_v31, %v591_v14  ;;  %v673_v40 = vpack.c.bf16 %v611_v35, %v611_v35  ;;  %v613_v42 = vsel %vm200_vm8, %v612_v32, %v595_v21  ;;  %v675_v43 = vpack.c.bf16 %v615_v36, %v615_v36 }
 0x28a   :  { %v672_v44 = vpack.c.bf16 %v609_v39, %v609_v39  ;;  %v674_v45 = vpack.c.bf16 %v613_v42, %v613_v42  ;;  %v641_v41 = vsel %vm200_vm8, %v640_v34, %v621_v11  ;;  %v652_v46 = vrot.slane %v639_v33, 4 }
 0x28b   :  { %v956_v47 = vsel %vm932_vm9, %v673_v40, 0  ;;  %v994_v48 = vsel %vm932_vm9, %v675_v43, 0  ;;  %v647_v49 = vperm.slane %v641_v41, %v2288_v17  ;;  %v643_v50 = vsel %vm200_vm8, %v627_v25, %v642_v37 }
 0x28c   :  { %v937_v51 = vsel %vm932_vm9, %v672_v44, 0  ;;  %965 = vmatpush.bf16.xpose.msra.mxu2 %v956_v47  ;;  %v975_v52 = vsel %vm932_vm9, %v674_v45, 0  ;;  %1003 = vmatpush.bf16.xpose.msrb.mxu0 %v994_v48  ;;  %v653_v53 = vsel %vm200_vm8, %v652_v46, %v633_v29  ;;  %v651_v54 = vperm.slane %v643_v50, %v2288_v17 }
 0x28d   :  { %946 = vmatpush.bf16.xpose.msra.mxu1 %v937_v51  ;;  %984 = vmatpush.bf16.xpose.msra.mxu3 %v975_v52  ;;  %v659_v56 = vperm.slane %v653_v53, %v2288_v17  ;;  %v666_v60 = vrot.slane %v647_v49, 4  ;;  %v655_v62 = vsel %vm200_vm8, %v639_v33, %v654_v38  ;;  %v423_v13 = vpack.c.bf16 %v2353_v55, %v2353_v55 }
 0x28e   :  { %v663_v1 = vperm.slane %v655_v62, %v2288_v17  ;;  %v670_v2 = vrot.slane %v651_v54, 4  ;;  %v420_v22 = vpack.c.bf16 %v2360_v63, %v2360_v63  ;;  %v421_v25 = vpack.c.bf16 %v2356_v59, %v2356_v59 }
 0x28f   :  { %v664_v3 = vrot.slane %v659_v56, 4  ;;  %v667_v5 = vsel %vm200_vm8, %v659_v56, %v666_v60  ;;  %v422_v63 = vpack.c.bf16 %v2363_v0, %v2363_v0  ;;  %v427_v59 = vpack.c.bf16 %v2379_v18, %v2379_v18 }
 0x290   :  { %v677_v6 = vpack.c.bf16 %v667_v5, %v667_v5  ;;  %v668_v7 = vrot.slane %v663_v1, 4  ;;  %v671_v8 = vsel %vm200_vm8, %v663_v1, %v670_v2  ;;  %v424_v27 = vpack.c.bf16 %v2376_v15, %v2376_v15 }
 0x291   :  { %v665_v9 = vsel %vm200_vm8, %v664_v3, %v647_v49  ;;  %v679_v11 = vpack.c.bf16 %v671_v8, %v671_v8  ;;  %v425_v28 = vpack.c.bf16 %v2373_v12, %v2373_v12  ;;  %v426_v0 = vpack.c.bf16 %v2382_v19, %v2382_v19 }
 0x292   :  { %v676_v14 = vpack.c.bf16 %v665_v9, %v665_v9  ;;  %v1032_v20 = vsel %vm932_vm9, %v677_v6, 0  ;;  %v669_v21 = vsel %vm200_vm8, %v668_v7, %v651_v54 }
 0x293   :  { %v678_v23 = vpack.c.bf16 %v669_v21, %v669_v21  ;;  %v1070_v24 = vsel %vm932_vm9, %v679_v11, 0  ;;  %1900 = vmatmul.msk.bf16.vlgmr.msrb.gmra.mxu0 %vm932_vm9, %v423_v13  ;;  %1898 = vmatmul.msk.bf16.vlgmr.msra.gmra.mxu2 %vm932_vm9, %v421_v25 }
 0x294   :  { %1041 = vmatpush.bf16.xpose.msrb.mxu2 %v1032_v20  ;;  %v1013_v26 = vsel %vm932_vm9, %v676_v14, 0  ;;  %1079 = vmatpush.bf16.xpose.msra.mxu0 %v1070_v24 }
 0x295   :  { %1897 = vmatmul.msk.bf16.vlgmr.msra.gmra.mxu1 %vm932_vm9, %v420_v22  ;;  %v1051_v55 = vsel %vm932_vm9, %v678_v23, 0  ;;  %1899 = vmatmul.msk.bf16.vlgmr.msra.gmra.mxu3 %vm932_vm9, %v422_v63 }
 0x296   :  { %1022 = vmatpush.bf16.xpose.msrb.mxu1 %v1013_v26  ;;  %1060 = vmatpush.bf16.xpose.msrb.mxu3 %v1051_v55 }
 0x2a3   :  { %1904 = vmatmul.msk.bf16.vlgmr.msra.gmra.mxu0 %vm932_vm9, %v427_v59  ;;  %1902 = vmatmul.msk.bf16.vlgmr.msrb.gmra.mxu2 %vm932_vm9, %v425_v28 }
 0x2a5   :  { %1901 = vmatmul.msk.bf16.vlgmr.msrb.gmra.mxu1 %vm932_vm9, %v424_v27  ;;  %1903 = vmatmul.msk.bf16.vlgmr.msrb.gmra.mxu3 %vm932_vm9, %v426_v0 }
 0x310   :  { %v1005_v29 = vpop.f32.mrf.mxu0 }
 0x311   :  { %v1094_v18 = vsel %vm932_vm9, %v1005_v29, -inf }
 0x312   :  { %v948_v30 = vpop.f32.mrf.mxu1  ;;  %1095 = vmax.xlane.f32.xlu1 %v1094_v18 }
 0x313   :  { %v1085_v15 = vsel %vm932_vm9, %v948_v30, -inf }
 0x314   :  { %1086 = vmax.xlane.f32.xlu0 %v1085_v15 }
 0x316   :  { %v967_v12 = vpop.f32.mrf.mxu2 }
 0x317   :  { %v1088_v34 = vsel %vm932_vm9, %v967_v12, -inf }
 0x318   :  { %v1007_v31 = vpop.f32.mrf.mxu0  ;;  %v986_v33 = vpop.f32.mrf.mxu3 }
 0x319   :  { %v1091_v35 = vsel %vm932_vm9, %v986_v33, -inf }
 0x31a   :  { %v950_v32 = vpop.f32.mrf.mxu1  ;;  %1092 = vmax.xlane.f32.xlu2 %v1091_v35 }
 0x31c   :  { %1089 = vmax.xlane.f32.xlu0 %v1088_v34 }
 0x31e   :  { %v969_v19 = vpop.f32.mrf.mxu2 }
 0x320   :  { %v1081_v36 = vpop.f32.mrf.mxu0  ;;  %v988_v39 = vpop.f32.mrf.mxu3 }
 0x321   :  { %v1106_v38 = vsel %vm932_vm9, %v1081_v36, -inf }
 0x322   :  { %v2500_v37 = vpop.f32.mrf.mxu1 }
 0x323   :  { %v1097_v40 = vsel %vm932_vm9, %v2500_v37, -inf }
 0x324   :  { %1107 = vmax.xlane.f32.xlu0 %v1106_v38  ;;  %1098 = vmax.xlane.f32.xlu2 %v1097_v40 }
 0x326   :  { %v1043_v42 = vpop.f32.mrf.mxu2 }
 0x327   :  { %v1100_v46 = vsel %vm932_vm9, %v1043_v42, -inf }
 0x328   :  { %v1083_v43 = vpop.f32.mrf.mxu0  ;;  %v1062_v45 = vpop.f32.mrf.mxu3 }
 0x329   :  { %v1103_v41 = vsel %vm932_vm9, %v1062_v45, -inf }
 0x32a   :  { %v1026_v44 = vpop.f32.mrf.mxu1  ;;  %1104 = vmax.xlane.f32.xlu1 %v1103_v41 }
 0x32c   :  { %1101 = vmax.xlane.f32.xlu2 %v1100_v46 }
 0x32e   :  { %v1045_v47 = vpop.f32.mrf.mxu2 }
 0x330   :  { %v1064_v48 = vpop.f32.mrf.mxu3 }
 0x338   :  { %2033 = vrot.lane.b32.xlu0 %v2266_v58, %s2151_s4 }
 0x340   :  { %2043 = vrot.lane.b32.xlu0 %v2286_v16, %s2151_s4 }
 0x343   :  { %2028 = vrot.lane.b32.xlu1 %v2259_v57, %s2151_s4 }
 0x344   :  { %2038 = vrot.lane.b32.xlu2 %v2272_v61, %s2151_s4 }
 0x385   :  { %v1096_v49 = vpop.xlane.xlu1 %1095 }
 0x386   :  { %v1112_v51 = vsub.f32 %v1005_v29, %v1096_v49 }
 0x387   :  { %v1087_v50 = vpop.xlane.xlu0 %1086 }
 0x388   :  { %v1123_v52 = vmul.f32 1.442695, %v1112_v51  ;;  %v1109_v1 = vsub.f32 %v948_v30, %v1087_v50 }
 0x38a   :  { %2076 = vpow2.f32 %v1123_v52  ;;  %v1117_v57 = vmul.f32 1.442695, %v1109_v1 }
 0x38d   :  { %v1093_v54 = vpop.xlane.xlu2 %1092 }
 0x38e   :  { %v1111_v62 = vsub.f32 %v986_v33, %v1093_v54 }
 0x38f   :  { %v1090_v53 = vpop.xlane.xlu0 %1089 }
 0x390   :  { %v1110_v56 = vsub.f32 %v967_v12, %v1090_v53  ;;  %v2511_v60 = vpop.eup %2076  ;;  %v1121_v16 = vmul.f32 1.442695, %v1111_v62 }
 0x391   :  { %v1142_v58 = vsel %vm932_vm9, %v2511_v60, 0.0 }
 0x392   :  { %v1119_v2 = vmul.f32 1.442695, %v1110_v56  ;;  %1143 = vadd.xlane.f32.xlu0 %v1142_v58 }
 0x394   :  { %2078 = vpow2.f32 %v1119_v2 }
 0x395   :  { %2080 = vpow2.f32 %v1121_v16 }
 0x396   :  { %2082 = vpow2.f32 %v1117_v57 }
 0x397   :  { %v1108_v61 = vpop.xlane.xlu0 %1107  ;;  %v1099_v3 = vpop.xlane.xlu2 %1098 }
 0x398   :  { %v1116_v6 = vsub.f32 %v1081_v36, %v1108_v61  ;;  %v1113_v23 = vsub.f32 %v2500_v37, %v1099_v3 }
 0x39a   :  { %v2515_v5 = vpop.eup %2078  ;;  %v1131_v11 = vmul.f32 1.442695, %v1116_v6  ;;  %v1125_v55 = vmul.f32 1.442695, %v1113_v23 }
 0x39b   :  { %v2517_v7 = vpop.eup %2080  ;;  %v1136_v8 = vsel %vm932_vm9, %v2515_v5, 0.0 }
 0x39c   :  { %1137 = vadd.xlane.f32.xlu1 %v1136_v8  ;;  %v1139_v9 = vsel %vm932_vm9, %v2517_v7, 0.0  ;;  %v2523_v13 = vpop.eup %2082  ;;  %2084 = vpow2.f32 %v1131_v11 }
 0x39d   :  { %1140 = vadd.xlane.f32.xlu2 %v1139_v9  ;;  %v1105_v14 = vpop.xlane.xlu1 %1104  ;;  %v1133_v26 = vsel %vm932_vm9, %v2523_v13, 0.0 }
 0x39e   :  { %v1115_v21 = vsub.f32 %v1062_v45, %v1105_v14 }
 0x39f   :  { %v1102_v20 = vpop.xlane.xlu2 %1101 }
 0x3a0   :  { %v1114_v22 = vsub.f32 %v1043_v42, %v1102_v20  ;;  %v1129_v24 = vmul.f32 1.442695, %v1115_v21 }
 0x3a2   :  { %v1127_v25 = vmul.f32 1.442695, %v1114_v22  ;;  %2086 = vpow2.f32 %v1129_v24  ;;  %v2528_v63 = vpop.eup %2084 }
 0x3a3   :  { %v1154_v28 = vsel %vm932_vm9, %v2528_v63, 0.0 }
 0x3a4   :  { %1134 = vadd.xlane.f32.xlu1 %v1133_v26  ;;  %2088 = vpow2.f32 %v1127_v25 }
 0x3a5   :  { %2090 = vpow2.f32 %v1125_v55 }
 0x3a7   :  { %v2039_v12 = vpop.permute.xlu2 %2038 }
 0x3a8   :  { %v2530_v27 = vpop.eup %2086  ;;  %v2041_v35 = vunpack.i.h.bf16 %v2039_v12  ;;  %v2040_v37 = vunpack.i.l.bf16 %v2039_v12 }
 0x3a9   :  { %v1151_v29 = vsel %vm932_vm9, %v2530_v27, 0.0 }
 0x3aa   :  { %v2034_v59 = vpop.permute.xlu0 %2033  ;;  %v2534_v0 = vpop.eup %2088  ;;  %1152 = vadd.xlane.f32.xlu0 %v1151_v29  ;;  %v760_v41 = vrot.slane %v2041_v35, 4  ;;  %v704_v49 = vrot.slane %v2040_v37, 4 }
 0x3ab   :  { %v1148_v30 = vsel %vm932_vm9, %v2534_v0, 0.0  ;;  %v2035_v18 = vunpack.i.l.bf16 %v2034_v59  ;;  %v2540_v15 = vpop.eup %2090  ;;  %v2036_v31 = vunpack.i.h.bf16 %v2034_v59 }
 0x3ac   :  { %1155 = vadd.xlane.f32.xlu1 %v1154_v28  ;;  %1149 = vadd.xlane.f32.xlu2 %v1148_v30  ;;  %v1145_v36 = vsel %vm932_vm9, %v2540_v15, 0.0 }
 0x3ad   :  { %v718_v19 = vrot.slane %v2035_v18, 4  ;;  %v774_v38 = vrot.slane %v2036_v31, 4 }
 0x3b2   :  { %v2044_v32 = vpop.permute.xlu0 %2043 }
 0x3b3   :  { %v2046_v33 = vunpack.i.h.bf16 %v2044_v32  ;;  %v2045_v34 = vunpack.i.l.bf16 %v2044_v32 }
 0x3b4   :  { %1146 = vadd.xlane.f32.xlu2 %v1145_v36 }
 0x3b5   :  { %v772_v39 = vrot.slane %v2046_v33, 4  ;;  %v716_v40 = vrot.slane %v2045_v34, 4  ;;  %v719_v42 = vsel %vm200_vm8, %v2045_v34, %v718_v19  ;;  %v775_v45 = vsel %vm200_vm8, %v2046_v33, %v774_v38  ;;  %v2029_v48 = vpop.permute.xlu1 %2028 }
 0x3b6   :  { %v727_v50 = vperm.slane %v719_v42, %v2278_v4  ;;  %v2031_v51 = vunpack.i.h.bf16 %v2029_v48  ;;  %v2030_v52 = vunpack.i.l.bf16 %v2029_v48  ;;  %v783_v54 = vperm.slane %v775_v45, %v2278_v4 }
 0x3b7   :  { %v717_v43 = vsel %vm200_vm8, %v716_v40, %v2035_v18  ;;  %v773_v44 = vsel %vm200_vm8, %v772_v39, %v2036_v31 }
 0x3b8   :  { %v723_v46 = vperm.slane %v717_v43, %v2278_v4  ;;  %v779_v47 = vperm.slane %v773_v44, %v2278_v4  ;;  %v762_v62 = vrot.slane %v2031_v51, 4  ;;  %v705_v1 = vsel %vm200_vm8, %v704_v49, %v2030_v52 }
 0x3b9   :  { %v706_v2 = vrot.slane %v2030_v52, 4  ;;  %v761_v58 = vsel %vm200_vm8, %v760_v41, %v2031_v51  ;;  %v711_v16 = vperm.slane %v705_v1, %v2278_v4  ;;  %v740_v61 = vrot.slane %v727_v50, 4 }
 0x3ba   :  { %v728_v53 = vrot.slane %v723_v46, 4  ;;  %v784_v56 = vrot.slane %v779_v47, 4  ;;  %v767_v57 = vperm.slane %v761_v58, %v2278_v4  ;;  %v763_v6 = vsel %vm200_vm8, %v2041_v35, %v762_v62 }
 0x3bb   :  { %v707_v3 = vsel %vm200_vm8, %v2040_v37, %v706_v2  ;;  %v730_v11 = vrot.slane %v711_v16, 4  ;;  %v771_v14 = vperm.slane %v763_v6, %v2278_v4  ;;  %v796_v20 = vrot.slane %v783_v54, 4 }
 0x3bc   :  { %v715_v8 = vperm.slane %v707_v3, %v2278_v4  ;;  %v729_v9 = vsel %vm200_vm8, %v728_v53, %v711_v16  ;;  %v785_v22 = vsel %vm200_vm8, %v784_v56, %v767_v57  ;;  %v786_v23 = vrot.slane %v767_v57, 4 }
 0x3bd   :  { %v735_v21 = vperm.slane %v729_v9, %v2288_v17  ;;  %v731_v24 = vsel %vm200_vm8, %v723_v46, %v730_v11  ;;  %v791_v55 = vperm.slane %v785_v22, %v2288_v17  ;;  %v797_v31 = vsel %vm200_vm8, %v796_v20, %v771_v14 }
 0x3be   :  { %v741_v25 = vsel %vm200_vm8, %v740_v61, %v715_v8  ;;  %v742_v26 = vrot.slane %v715_v8, 4  ;;  %v739_v59 = vperm.slane %v731_v24, %v2288_v17  ;;  %v787_v30 = vsel %vm200_vm8, %v779_v47, %v786_v23 }
 0x3bf   :  { %v747_v28 = vperm.slane %v741_v25, %v2288_v17  ;;  %v752_v29 = vrot.slane %v735_v21, 4  ;;  %v795_v12 = vperm.slane %v787_v30, %v2288_v17  ;;  %v798_v32 = vrot.slane %v771_v14, 4 }
 0x3c0   :  { %v743_v18 = vsel %vm200_vm8, %v727_v50, %v742_v26  ;;  %v754_v35 = vrot.slane %v739_v59, 4  ;;  %v803_v37 = vperm.slane %v797_v31, %v2288_v17  ;;  %v808_v38 = vrot.slane %v791_v55, 4 }
 0x3c1   :  { %v751_v33 = vperm.slane %v743_v18, %v2288_v17  ;;  %v753_v34 = vsel %vm200_vm8, 0.0, %v752_v29  ;;  %v756_v19 = vrot.slane %v747_v28, 4  ;;  %v799_v36 = vsel %vm200_vm8, %v783_v54, %v798_v32 }
 0x3c2   :  { %v810_v39 = vrot.slane %v795_v12, 4  ;;  %v755_v40 = vsel %vm200_vm8, 0.0, %v754_v35  ;;  %v807_v44 = vperm.slane %v799_v36, %v2288_v17  ;;  %v809_v45 = vsel %vm200_vm8, 0.0, %v808_v38 }
 0x3c3   :  { %v757_v42 = vsel %vm200_vm8, 0.0, %v756_v19  ;;  %v758_v43 = vrot.slane %v751_v33, 4  ;;  %v812_v46 = vrot.slane %v803_v37, 4  ;;  %v816_v47 = vsel %vm200_vm8, %v756_v19, %v735_v21 }
 0x3c4   :  { %v811_v41 = vsel %vm200_vm8, 0.0, %v810_v39  ;;  %v814_v49 = vrot.slane %v807_v44, 4  ;;  %v868_v50 = vrot.slane %v757_v42, 4  ;;  %v820_v51 = vperm.slane %v816_v47, %v2278_v4 }
 0x3c5   :  { %v759_v48 = vsel %vm200_vm8, 0.0, %v758_v43  ;;  %v813_v52 = vsel %vm200_vm8, 0.0, %v812_v46  ;;  %v826_v53 = vsel %vm200_vm8, %v812_v46, %v791_v55  ;;  %v821_v56 = vsel %vm200_vm8, %v758_v43, %v739_v59 }
 0x3c6   :  { %v874_v54 = vrot.slane %v759_v48, 4  ;;  %v815_v62 = vsel %vm200_vm8, 0.0, %v814_v49  ;;  %v830_v1 = vperm.slane %v826_v53, %v2278_v4  ;;  %v880_v2 = vrot.slane %v813_v52, 4 }
 0x3c7   :  { %v825_v58 = vperm.slane %v821_v56, %v2278_v4  ;;  %v886_v16 = vrot.slane %v815_v62, 4  ;;  %v831_v57 = vsel %vm200_vm8, %v814_v49, %v795_v12  ;;  %v838_v61 = vrot.slane %v820_v51, 4 }
 0x3c8   :  { %v869_v3 = vsel %vm200_vm8, %v868_v50, %v753_v34  ;;  %v881_v6 = vsel %vm200_vm8, %v880_v2, %v809_v45  ;;  %v835_v8 = vperm.slane %v831_v57, %v2278_v4  ;;  %v850_v9 = vrot.slane %v830_v1, 4 }
 0x3c9   :  { %v836_v11 = vrot.slane %v825_v58, 4  ;;  %v839_v14 = vsel %vm200_vm8, %v825_v58, %v838_v61  ;;  %v873_v20 = vperm.slane %v869_v3, %v2278_v4  ;;  %v875_v21 = vsel %vm200_vm8, %v874_v54, %v755_v40 }
 0x3ca   :  { %v885_v22 = vperm.slane %v881_v6, %v2278_v4  ;;  %v847_v23 = vperm.slane %v839_v14, %v2288_v17  ;;  %v851_v24 = vsel %vm200_vm8, %v835_v8, %v850_v9  ;;  %v848_v26 = vrot.slane %v835_v8, 4 }
 0x3cb   :  { %v837_v25 = vsel %vm200_vm8, %v836_v11, %v820_v51  ;;  %v859_v55 = vperm.slane %v851_v24, %v2288_v17  ;;  %v879_v28 = vperm.slane %v875_v21, %v2278_v4  ;;  %v887_v29 = vsel %vm200_vm8, %v886_v16, %v811_v41 }
 0x3cc   :  { %v843_v59 = vperm.slane %v837_v25, %v2288_v17  ;;  %v866_v30 = vrot.slane %v847_v23, 4  ;;  %v849_v18 = vsel %vm200_vm8, %v848_v26, %v830_v1  ;;  %v891_v12 = vperm.slane %v887_v29, %v2278_v4 }
 0x3cd   :  { %v894_v31 = vrot.slane %v873_v20, 4  ;;  %v864_v32 = vrot.slane %v859_v55, 4  ;;  %v855_v33 = vperm.slane %v849_v18, %v2288_v17  ;;  %v906_v35 = vrot.slane %v885_v22, 4 }
 0x3ce   :  { %v862_v34 = vrot.slane %v843_v59, 4  ;;  %v867_v19 = vsel %vm200_vm8, %v859_v55, %v866_v30  ;;  %v892_v37 = vrot.slane %v879_v28, 4  ;;  %v904_v38 = vrot.slane %v891_v12, 4 }
 0x3cf   :  { %v895_v36 = vsel %vm200_vm8, %v879_v28, %v894_v31  ;;  %v865_v39 = vsel %vm200_vm8, %v864_v32, %v847_v23  ;;  %v927_v40 = vpack.c.bf16 %v867_v19, %v867_v19  ;;  %v860_v42 = vrot.slane %v855_v33, 4 }
 0x3d0   :  { %v863_v43 = vsel %vm200_vm8, %v855_v33, %v862_v34  ;;  %v926_v44 = vpack.c.bf16 %v865_v39, %v865_v39  ;;  %v903_v41 = vperm.slane %v895_v36, %v2288_v17  ;;  %v907_v46 = vsel %vm200_vm8, %v891_v12, %v906_v35 }
 0x3d1   :  { %v925_v45 = vpack.c.bf16 %v863_v43, %v863_v43  ;;  %v1243_v47 = vsel %vm1184_vm10, %v927_v40, 0  ;;  %v861_v48 = vsel %vm200_vm8, %v860_v42, %v843_v59  ;;  %v915_v49 = vperm.slane %v907_v46, %v2288_v17 }
 0x3d2   :  { %v893_v50 = vsel %vm200_vm8, %v892_v37, %v873_v20  ;;  %v1224_v51 = vsel %vm1184_vm10, %v926_v44, 0  ;;  %1252 = vmatpush.bf16.msrb.mxu0 %v1243_v47  ;;  %v924_v52 = vpack.c.bf16 %v861_v48, %v861_v48  ;;  %v922_v54 = vrot.slane %v903_v41, 4 }
 0x3d3   :  { %v1205_v53 = vsel %vm1184_vm10, %v925_v45, 0  ;;  %1233 = vmatpush.bf16.msra.mxu3 %v1224_v51  ;;  %v920_v56 = vrot.slane %v915_v49, 4  ;;  %v899_v62 = vperm.slane %v893_v50, %v2288_v17  ;;  %v905_v1 = vsel %vm200_vm8, %v904_v38, %v885_v22 }
 0x3d4   :  { %1214 = vmatpush.bf16.msra.mxu2 %v1205_v53  ;;  %v1186_v2 = vsel %vm1184_vm10, %v924_v52, 0  ;;  %v923_v58 = vsel %vm200_vm8, %v915_v49, %v922_v54  ;;  %v911_v16 = vperm.slane %v905_v1, %v2288_v17 }
 0x3d5   :  { %1195 = vmatpush.bf16.msra.mxu1 %v1186_v2  ;;  %v921_v57 = vsel %vm200_vm8, %v920_v56, %v903_v41  ;;  %v931_v61 = vpack.c.bf16 %v923_v58, %v923_v58  ;;  %v918_v3 = vrot.slane %v899_v62, 4 }
 0x3d6   :  { %v930_v6 = vpack.c.bf16 %v921_v57, %v921_v57  ;;  %v916_v8 = vrot.slane %v911_v16, 4 }
 0x3d7   :  { %v1319_v9 = vsel %vm1184_vm10, %v931_v61, 0  ;;  %v919_v11 = vsel %vm200_vm8, %v911_v16, %v918_v3 }
 0x3d8   :  { %v1300_v14 = vsel %vm1184_vm10, %v930_v6, 0  ;;  %1328 = vmatpush.bf16.msra.mxu0 %v1319_v9  ;;  %v917_v20 = vsel %vm200_vm8, %v916_v8, %v899_v62  ;;  %v929_v21 = vpack.c.bf16 %v919_v11, %v919_v11 }
 0x3d9   :  { %1309 = vmatpush.bf16.msrb.mxu3 %v1300_v14  ;;  %v928_v22 = vpack.c.bf16 %v917_v20, %v917_v20 }
 0x3da   :  { %v1281_v23 = vsel %vm1184_vm10, %v929_v21, 0 }
 0x3db   :  { %v1262_v24 = vsel %vm1184_vm10, %v928_v22, 0  ;;  %1290 = vmatpush.bf16.msrb.mxu2 %v1281_v23 }
 0x3dc   :  { %1271 = vmatpush.bf16.msrb.mxu1 %v1262_v24 }
 0x405   :  { %v1144_v25 = vpop.xlane.xlu0 %1143 }
 0x406   :  { %2092 = vrcp.f32 %v1144_v25 }
 0x40c   :  { %v2093_v26 = vpop.eup %2092 }
 0x40d   :  { %v1168_v55 = vmul.f32 %v2093_v26, %v2511_v60 }
 0x40f   :  { %v1138_v59 = vpop.xlane.xlu1 %1137  ;;  %v1176_v28 = vpack.c.bf16 %v1168_v55, %v1168_v55 }
 0x410   :  { %2094 = vrcp.f32 %v1138_v59  ;;  %v1141_v29 = vpop.xlane.xlu2 %1140 }
 0x411   :  { %2096 = vrcp.f32 %v1141_v29  ;;  %1908 = vmatmul.msk.bf16.vlgmr.msrb.gmra.mxu0 %vm932_vm9, %v1176_v28 }
 0x416   :  { %v2095_v30 = vpop.eup %2094 }
 0x417   :  { %v2097_v18 = vpop.eup %2096  ;;  %v1166_v12 = vmul.f32 %v2095_v30, %v2515_v5  ;;  %v1135_v31 = vpop.xlane.xlu1 %1134 }
 0x418   :  { %v1167_v32 = vmul.f32 %v2097_v18, %v2517_v7  ;;  %2098 = vrcp.f32 %v1135_v31 }
 0x419   :  { %v1174_v33 = vpack.c.bf16 %v1166_v12, %v1166_v12 }
 0x41a   :  { %v1175_v34 = vpack.c.bf16 %v1167_v32, %v1167_v32 }
 0x41b   :  { %1906 = vmatmul.msk.bf16.vlgmr.msra.gmra.mxu2 %vm932_vm9, %v1174_v33 }
 0x41c   :  { %1907 = vmatmul.msk.bf16.vlgmr.msra.gmra.mxu3 %vm932_vm9, %v1175_v34 }
 0x41d   :  { %v1153_v36 = vpop.xlane.xlu0 %1152 }
 0x41e   :  { %v2099_v60 = vpop.eup %2098 }
 0x41f   :  { %v1165_v35 = vmul.f32 %v2099_v60, %v2523_v13  ;;  %v1156_v19 = vpop.xlane.xlu1 %1155  ;;  %v1150_v38 = vpop.xlane.xlu2 %1149 }
 0x420   :  { %2100 = vrcp.f32 %v1156_v19 }
 0x421   :  { %v1173_v37 = vpack.c.bf16 %v1165_v35, %v1165_v35  ;;  %2102 = vrcp.f32 %v1153_v36 }
 0x422   :  { %2104 = vrcp.f32 %v1150_v38 }
 0x423   :  { %1905 = vmatmul.msk.bf16.vlgmr.msra.gmra.mxu1 %vm932_vm9, %v1173_v37 }
 0x426   :  { %v2101_v5 = vpop.eup %2100 }
 0x427   :  { %v2103_v7 = vpop.eup %2102  ;;  %v1172_v39 = vmul.f32 %v2101_v5, %v2528_v63  ;;  %v1147_v13 = vpop.xlane.xlu2 %1146 }
 0x428   :  { %v2105_v40 = vpop.eup %2104  ;;  %v1171_v42 = vmul.f32 %v2103_v7, %v2530_v27  ;;  %2106 = vrcp.f32 %v1147_v13 }
 0x429   :  { %v1180_v43 = vpack.c.bf16 %v1172_v39, %v1172_v39  ;;  %v1170_v44 = vmul.f32 %v2105_v40, %v2534_v0 }
 0x42a   :  { %v1179_v45 = vpack.c.bf16 %v1171_v42, %v1171_v42 }
 0x42b   :  { %v1178_v41 = vpack.c.bf16 %v1170_v44, %v1170_v44  ;;  %1912 = vmatmul.msk.bf16.vlgmr.msra.gmra.mxu0 %vm932_vm9, %v1180_v43 }
 0x42c   :  { %1911 = vmatmul.msk.bf16.vlgmr.msrb.gmra.mxu3 %vm932_vm9, %v1179_v45 }
 0x42d   :  { %1910 = vmatmul.msk.bf16.vlgmr.msrb.gmra.mxu2 %vm932_vm9, %v1178_v41 }
 0x42e   :  { %v2107_v46 = vpop.eup %2106 }
 0x42f   :  { %v1169_v47 = vmul.f32 %v2107_v46, %v2540_v15 }
 0x431   :  { %v1177_v63 = vpack.c.bf16 %v1169_v47, %v1169_v47 }
 0x433   :  { %1909 = vmatmul.msk.bf16.vlgmr.msrb.gmra.mxu1 %vm932_vm9, %v1177_v63 }
 0x48e   :  { %v1254_v27 = vpop.f32.mrf.mxu0 }
 0x48f   :  { %v1346_v49 = vrot.slane %v1254_v27, 4 }
 0x496   :  { %v1256_v48 = vpop.f32.mrf.mxu0 }
 0x49e   :  { %v1216_v0 = vpop.f32.mrf.mxu2 }
 0x49f   :  { %v1347_v50 = vsel %vm200_vm8, %v1346_v49, %v1216_v0  ;;  %v1348_v51 = vrot.slane %v1216_v0, 4  ;;  %v1235_v52 = vpop.f32.mrf.mxu3 }
 0x4a0   :  { %v1353_v53 = vperm.slane %v1347_v50, %v2278_v4  ;;  %v1334_v54 = vrot.slane %v1235_v52, 4  ;;  %v1197_v56 = vpop.f32.mrf.mxu1 }
 0x4a1   :  { %v1349_v62 = vsel %vm200_vm8, %v1254_v27, %v1348_v51  ;;  %v1336_v1 = vrot.slane %v1197_v56, 4 }
 0x4a2   :  { %v1357_v15 = vperm.slane %v1349_v62, %v2278_v4  ;;  %v1358_v2 = vrot.slane %v1353_v53, 4  ;;  %v1335_v58 = vsel %vm200_vm8, %v1334_v54, %v1197_v56 }
 0x4a3   :  { %v1337_v16 = vsel %vm200_vm8, %v1235_v52, %v1336_v1  ;;  %v1341_v57 = vperm.slane %v1335_v58, %v2278_v4 }
 0x4a4   :  { %v1370_v61 = vrot.slane %v1357_v15, 4  ;;  %v1345_v3 = vperm.slane %v1337_v16, %v2278_v4 }
 0x4a5   :  { %v1359_v6 = vsel %vm200_vm8, %v1358_v2, %v1341_v57  ;;  %v1360_v8 = vrot.slane %v1341_v57, 4 }
 0x4a6   :  { %v1371_v9 = vsel %vm200_vm8, %v1370_v61, %v1345_v3  ;;  %v1372_v11 = vrot.slane %v1345_v3, 4  ;;  %v1218_v14 = vpop.f32.mrf.mxu2  ;;  %v1365_v21 = vperm.slane %v1359_v6, %v2288_v17 }
 0x4a7   :  { %v1361_v20 = vsel %vm200_vm8, %v1353_v53, %v1360_v8  ;;  %v1237_v22 = vpop.f32.mrf.mxu3  ;;  %v1377_v24 = vperm.slane %v1371_v9, %v2288_v17 }
 0x4a8   :  { %v1373_v23 = vsel %vm200_vm8, %v1357_v15, %v1372_v11  ;;  %v1199_v25 = vpop.f32.mrf.mxu1  ;;  %v1330_v26 = vpop.f32.mrf.mxu0  ;;  %v1369_v55 = vperm.slane %v1361_v20, %v2288_v17  ;;  %v1382_v28 = vrot.slane %v1365_v21, 4 }
 0x4a9   :  { %v1381_v59 = vperm.slane %v1373_v23, %v2288_v17  ;;  %v1386_v29 = vrot.slane %v1377_v24, 4  ;;  %v1402_v31 = vrot.slane %v1330_v26, 4 }
 0x4aa   :  { %v1384_v30 = vrot.slane %v1369_v55, 4  ;;  %v1383_v12 = vsel %vm200_vm8, 0.0, %v1382_v28 }
 0x4ab   :  { %v1388_v18 = vrot.slane %v1381_v59, 4  ;;  %v1387_v33 = vsel %vm200_vm8, 0.0, %v1386_v29  ;;  %v1446_v5 = vrot.slane %v1383_v12, 4 }
 0x4ac   :  { %v1385_v37 = vsel %vm200_vm8, 0.0, %v1384_v30  ;;  %v1502_v40 = vrot.slane %v1387_v33, 4 }
 0x4ad   :  { %v1389_v38 = vsel %vm200_vm8, 0.0, %v1388_v18  ;;  %v1458_v46 = vrot.slane %v1385_v37, 4  ;;  %v1447_v50 = vsel %vm200_vm8, %v1446_v5, %v1365_v21 }
 0x4ae   :  { %v1514_v47 = vrot.slane %v1389_v38, 4  ;;  %v1503_v51 = vsel %vm200_vm8, %v1502_v40, %v1377_v24  ;;  %v1451_v57 = vperm.slane %v1447_v50, %v2278_v4 }
 0x4af   :  { %v1311_v32 = vpop.f32.mrf.mxu3  ;;  %v1459_v15 = vsel %vm200_vm8, %v1458_v46, %v1369_v55  ;;  %v1507_v61 = vperm.slane %v1503_v51, %v2278_v4 }
 0x4b0   :  { %v1292_v34 = vpop.f32.mrf.mxu2  ;;  %v1390_v60 = vrot.slane %v1311_v32, 4  ;;  %v1332_v35 = vpop.f32.mrf.mxu0  ;;  %v1515_v8 = vsel %vm200_vm8, %v1514_v47, %v1381_v59  ;;  %v1463_v21 = vperm.slane %v1459_v15, %v2278_v4  ;;  %v1472_v29 = vrot.slane %v1451_v57, 4 }
 0x4b1   :  { %v1403_v19 = vsel %vm200_vm8, %v1402_v31, %v1292_v34  ;;  %v1404_v36 = vrot.slane %v1292_v34, 4  ;;  %v1273_v39 = vpop.f32.mrf.mxu1  ;;  %v1519_v59 = vperm.slane %v1515_v8, %v2278_v4  ;;  %v1528_v12 = vrot.slane %v1507_v61, 4 }
 0x4b2   :  { %v1409_v7 = vperm.slane %v1403_v19, %v2278_v4  ;;  %v1391_v43 = vsel %vm200_vm8, %v1390_v60, %v1273_v39  ;;  %v1392_v44 = vrot.slane %v1273_v39, 4  ;;  %v1484_v34 = vrot.slane %v1463_v21, 4 }
 0x4b3   :  { %v1405_v42 = vsel %vm200_vm8, %v1330_v26, %v1404_v36  ;;  %v1397_v41 = vperm.slane %v1391_v43, %v2278_v4  ;;  %v1540_v5 = vrot.slane %v1519_v59, 4 }
 0x4b4   :  { %v1413_v13 = vperm.slane %v1405_v42, %v2278_v4  ;;  %v1414_v45 = vrot.slane %v1409_v7, 4  ;;  %v1393_v63 = vsel %vm200_vm8, %v1311_v32, %v1392_v44 }
 0x4b5   :  { %v1401_v48 = vperm.slane %v1393_v63, %v2278_v4  ;;  %v1416_v0 = vrot.slane %v1397_v41, 4 }
 0x4b6   :  { %v1426_v27 = vrot.slane %v1413_v13, 4  ;;  %v1415_v49 = vsel %vm200_vm8, %v1414_v45, %v1397_v41 }
 0x4b7   :  { %v1421_v52 = vperm.slane %v1415_v49, %v2288_v17  ;;  %v1313_v53 = vpop.f32.mrf.mxu3  ;;  %v1417_v54 = vsel %vm200_vm8, %v1409_v7, %v1416_v0  ;;  %v1428_v62 = vrot.slane %v1401_v48, 4 }
 0x4b8   :  { %v1427_v56 = vsel %vm200_vm8, %v1426_v27, %v1401_v48  ;;  %v1294_v1 = vpop.f32.mrf.mxu2  ;;  %v1425_v2 = vperm.slane %v1417_v54, %v2288_v17 }
 0x4b9   :  { %v1433_v58 = vperm.slane %v1427_v56, %v2288_v17  ;;  %v1438_v16 = vrot.slane %v1421_v52, 4  ;;  %v1429_v3 = vsel %vm200_vm8, %v1413_v13, %v1428_v62  ;;  %v1275_v6 = vpop.f32.mrf.mxu1 }
 0x4ba   :  { %v1437_v9 = vperm.slane %v1429_v3, %v2288_v17  ;;  %v1440_v14 = vrot.slane %v1425_v2, 4 }
 0x4bb   :  { %v1439_v11 = vsel %vm200_vm8, 0.0, %v1438_v16  ;;  %v1442_v20 = vrot.slane %v1433_v58, 4 }
 0x4bc   :  { %v1452_v22 = vrot.slane %v1439_v11, 4  ;;  %v1441_v23 = vsel %vm200_vm8, 0.0, %v1440_v14  ;;  %v1444_v25 = vrot.slane %v1437_v9, 4  ;;  %v1968_v14 = vld [vmem:[%s2837_s5 + $0x8] sm:$0xff] }
 0x4bd   :  { %v1443_v24 = vsel %vm200_vm8, 0.0, %v1442_v20  ;;  %v1464_v55 = vrot.slane %v1441_v23, 4  ;;  %1615 = vmatpush.bf16.msra.mxu1 %v1968_v14  ;;  %v1967_v20 = vld [vmem:[%s2837_s5] sm:$0xff] }
 0x4be   :  { %v1453_v26 = vsel %vm200_vm8, %v1452_v22, %v1421_v52  ;;  %v1508_v28 = vrot.slane %v1443_v24, 4  ;;  %v1445_v30 = vsel %vm200_vm8, 0.0, %v1444_v25 }
 0x4bf   :  { %v1457_v18 = vperm.slane %v1453_v26, %v2278_v4  ;;  %v1465_v31 = vsel %vm200_vm8, %v1464_v55, %v1425_v2  ;;  %v1520_v33 = vrot.slane %v1445_v30, 4 }
 0x4c0   :  { %v1509_v32 = vsel %vm200_vm8, %v1508_v28, %v1433_v58  ;;  %v1469_v35 = vperm.slane %v1465_v31, %v2278_v4 }
 0x4c1   :  { %v1470_v60 = vrot.slane %v1457_v18, 4  ;;  %v1473_v19 = vsel %vm200_vm8, %v1457_v18, %v1472_v29  ;;  %v1513_v36 = vperm.slane %v1509_v32, %v2278_v4  ;;  %v1521_v38 = vsel %vm200_vm8, %v1520_v33, %v1437_v9  ;;  %1616 = vmatpush.bf16.msra.mxu1 %v1967_v20 }
 0x4c2   :  { %v1481_v37 = vperm.slane %v1473_v19, %v2288_v17  ;;  %v1485_v7 = vsel %vm200_vm8, %v1469_v35, %v1484_v34  ;;  %v1525_v39 = vperm.slane %v1521_v38, %v2278_v4  ;;  %v1482_v46 = vrot.slane %v1469_v35, 4  ;;  %v2065_v34 = vld [vmem:[%s2838_s6] ss:$0 sm:$0xff] }
 0x4c3   :  { %v1529_v40 = vsel %vm200_vm8, %v1513_v36, %v1528_v12  ;;  %v1471_v42 = vsel %vm200_vm8, %v1470_v60, %v1451_v57  ;;  %v1493_v43 = vperm.slane %v1485_v7, %v2288_v17  ;;  %v1526_v47 = vrot.slane %v1513_v36, 4  ;;  %v2116_v19 = vld [vmem:[%s2832_s0] sm:$0xff]  ;;  %v2117_v7 = vld [vmem:[%s2832_s0 + $0x8] sm:$0xff] }
 0x4c4   :  { %v1500_v44 = vrot.slane %v1481_v37, 4  ;;  %v1537_v13 = vperm.slane %v1529_v40, %v2288_v17  ;;  %v1477_v45 = vperm.slane %v1471_v42, %v2288_v17  ;;  %v1541_v41 = vsel %vm200_vm8, %v1525_v39, %v1540_v5 }
 0x4c5   :  { %v1538_v63 = vrot.slane %v1525_v39, 4  ;;  %v1549_v27 = vperm.slane %v1541_v41, %v2288_v17  ;;  %v1498_v4 = vrot.slane %v1493_v43, 4  ;;  %v1483_v49 = vsel %vm200_vm8, %v1482_v46, %v1463_v21 }
 0x4c6   :  { %v1556_v48 = vrot.slane %v1537_v13, 4  ;;  %v1527_v0 = vsel %vm200_vm8, %v1526_v47, %v1507_v61  ;;  %v1501_v51 = vsel %vm200_vm8, %v1493_v43, %v1500_v44  ;;  %v1489_v54 = vperm.slane %v1483_v49, %v2288_v17  ;;  %v1970_v49 = vld [vmem:[%s2841_s9 + $0x8] sm:$0xff] }
 0x4c7   :  { %v1539_v50 = vsel %vm200_vm8, %v1538_v63, %v1519_v59  ;;  %v1554_v53 = vrot.slane %v1549_v27, 4  ;;  %v1496_v62 = vrot.slane %v1477_v45, 4  ;;  %v1533_v1 = vperm.slane %v1527_v0, %v2288_v17  ;;  %1704 = vmatpush.bf16.msra.mxu2 %v1970_v49  ;;  %v1973_v49 = vld [vmem:[%s2843_s11 + $0x10] sm:$0xff] }
 0x4c8   :  { %v1557_v52 = vsel %vm200_vm8, %v1549_v27, %v1556_v48  ;;  %v1545_v15 = vperm.slane %v1539_v50, %v2288_v17  ;;  %v1499_v2 = vsel %vm200_vm8, %v1498_v4, %v1481_v37  ;;  %v1494_v16 = vrot.slane %v1489_v54, 4  ;;  %v1969_v50 = vld [vmem:[%s2841_s9] sm:$0xff]  ;;  %s1874_s9 = sshll.u32 %s2155_s18, 4  ;;  %s1875_s9 = int_to_ptr.vmem [resolvable:$true] %s1874_s9 }
 0x4c9   :  { %v2057_v56 = vpack.i.bf16 %v1557_v52, %v1501_v51  ;;  %v1555_v58 = vsel %vm200_vm8, %v1554_v53, %v1537_v13  ;;  %v1552_v3 = vrot.slane %v1533_v1, 4  ;;  %v1497_v8 = vsel %vm200_vm8, %v1489_v54, %v1496_v62 }
 0x4ca   :  { %v2052_v57 = vpack.i.bf16 %v1555_v58, %v1499_v2  ;;  %v1550_v61 = vrot.slane %v1545_v15, 4  ;;  %v1495_v6 = vsel %vm200_vm8, %v1494_v16, %v1477_v45 }
 0x4cb   :  { %2058 = vrot.lane.b32.xlu2 %v2057_v56, %s2152_s23  ;;  %v1553_v9 = vsel %vm200_vm8, %v1545_v15, %v1552_v3  ;;  %1705 = vmatpush.bf16.msra.mxu2 %v1969_v50 }
 0x4cc   :  { %2053 = vrot.lane.b32.xlu1 %v2052_v57, %s2153_s24  ;;  %v1551_v17 = vsel %vm200_vm8, %v1550_v61, %v1533_v1  ;;  %v2047_v11 = vpack.i.bf16 %v1553_v9, %v1497_v8 }
 0x4ce   :  { %2048 = vrot.lane.b32.xlu0 %v2047_v11, %s2154_s25  ;;  %v2067_v11 = vld [vmem:[%s2840_s8] ss:$0 sm:$0xff] }
 0x525   :  { %v2059_v22 = vpop.permute.xlu2 %2058 }
 0x526   :  { %v2061_v28 = vunpack.i.h.bf16 %v2059_v22  ;;  %v2060_v59 = vunpack.i.l.bf16 %v2059_v22 }
 0x53e   :  { %v2054_v21 = vpop.permute.xlu1 %2053 }
 0x53f   :  { %v2056_v23 = vunpack.i.h.bf16 %v2054_v21  ;;  %v2055_v24 = vunpack.i.l.bf16 %v2054_v21 }
 0x540   :  { %v2049_v25 = vpop.permute.xlu0 %2048 }
 0x541   :  { %v2051_v26 = vunpack.i.h.bf16 %v2049_v25  ;;  %v2050_v55 = vunpack.i.l.bf16 %v2049_v25  ;;  %v2068_v25 = vld [vmem:[%s2842_s10] ss:$0 sm:$0xff] }
 0x543   :  { %v1583_v29 = vsel %vm932_vm9, %v1551_v17, %v2051_v26  ;;  %v1582_v30 = vsel %vm932_vm9, %v1495_v6, %v2050_v55 }
 0x544   :  { %v1586_v18 = vsel %vm1584_vm11, %v1583_v29, %v2056_v23  ;;  %v1585_v12 = vsel %vm1584_vm11, %v1582_v30, %v2055_v24  ;;  %v1977_v30 = vld [vmem:[%s2843_s11 + $0x30] sm:$0xff] }
 0x545   :  { %v1589_v31 = vsel %vm1587_vm12, %v1586_v18, %v2061_v28  ;;  %v1588_v32 = vsel %vm1587_vm12, %v1585_v12, %v2060_v59  ;;  %v1978_v28 = vld [vmem:[%s2843_s11 + $0x38] sm:$0xff] }
 0x546   :  { %v1590_v33 = vpack.c.bf16 %v1589_v31, %v1588_v32  ;;  %1852 = vmatpush.bf16.msra.mxu3 %v1978_v28 }
 0x548   :  { %1921 = vmatmul.msk.bf16.vlgmr.msra.gmra.mxu1 %vm84_vm0, %v1590_v33 }
 0x54a   :  { %1853 = vmatpush.bf16.msra.mxu3 %v1977_v30 }
 0x5c5   :  { %v1618_v60 = vpop.f32.mrf.mxu1 }
 0x5c6   :  { %v1619_v35 = vadd.f32 %v2065_v34, %v1618_v60 }
 0x5c8   :  { %v2744_v36 = vadd.f32 %v2116_v19, %v1619_v35 }
 0x5ca   :  { %v1625_v37 = vsel %vm84_vm0, %v2744_v36, 0.0 }
 0x5cb   :  { %1626 = vadd.xlane.f32.xlu0 %v1625_v37 }
 0x5cd   :  { %v1620_v38 = vpop.f32.mrf.mxu1 }
 0x5ce   :  { %v1621_v5 = vadd.f32 %v2065_v34, %v1620_v38  ;;  %v1976_v34 = vld [vmem:[%s2843_s11 + $0x28] sm:$0xff] }
 0x5cf   :  { %1854 = vmatpush.bf16.msra.mxu3 %v1976_v34 }
 0x5d0   :  { %v2751_v39 = vadd.f32 %v2117_v7, %v1621_v5  ;;  %v1975_v5 = vld [vmem:[%s2843_s11 + $0x20] sm:$0xff] }
 0x5d2   :  { %v1628_v40 = vsel %vm84_vm0, %v2751_v39, 0.0 }
 0x5d3   :  { %1629 = vadd.xlane.f32.xlu1 %v1628_v40  ;;  %1855 = vmatpush.bf16.msra.mxu3 %v1975_v5 }
 0x63e   :  { %v1627_v42 = vpop.xlane.xlu0 %1626 }
 0x63f   :  { %v1631_v43 = vmul.f32 %v1627_v42, %v2235_v10 }
 0x641   :  { %v1633_v44 = vsub.f32 %v2744_v36, %v1631_v43 }
 0x643   :  { %v1635_v13 = vmul.f32 %v1633_v44, %v1633_v44 }
 0x645   :  { %v1637_v45 = vsel %vm84_vm0, %v1635_v13, 0.0 }
 0x646   :  { %v1630_v41 = vpop.xlane.xlu1 %1629  ;;  %1638 = vadd.xlane.f32.xlu2 %v1637_v45  ;;  %v1974_v45 = vld [vmem:[%s2843_s11 + $0x18] sm:$0xff] }
 0x647   :  { %v1632_v46 = vmul.f32 %v1630_v41, %v2235_v10  ;;  %1856 = vmatpush.bf16.msra.mxu3 %v1974_v45 }
 0x649   :  { %v1634_v47 = vsub.f32 %v2751_v39, %v1632_v46 }
 0x64b   :  { %v1636_v63 = vmul.f32 %v1634_v47, %v1634_v47  ;;  %1857 = vmatpush.bf16.msra.mxu3 %v1973_v49  ;;  %v2069_v49 = vld [vmem:[%s2844_s12] ss:$0 sm:$0xff]  ;;  %s2156_s12 = smov 128  }
 0x64d   :  { %v1640_v27 = vsel %vm84_vm0, %v1636_v63, 0.0 }
 0x64e   :  { %1641 = vadd.xlane.f32.xlu0 %v1640_v27 }
 0x6b9   :  { %v1639_v48 = vpop.xlane.xlu2 %1638 }
 0x6ba   :  { %v1643_v4 = vmul.f32 %v1639_v48, %v2235_v10 }
 0x6bc   :  { %v1645_v0 = vadd.f32 1e-05, %v1643_v4 }
 0x6be   :  { %2108 = vrsqrt.f32 %v1645_v0  ;;  %vm1653_vm14 = vweird.f32 %v1645_v0 }
 0x6c1   :  { %v1642_v51 = vpop.xlane.xlu0 %1641 }
 0x6c2   :  { %v1644_v52 = vmul.f32 %v1642_v51, %v2235_v10  ;;  %v2066_v10 = vld [vmem:[%s2839_s7] ss:$0 sm:$0xff] }
 0x6c4   :  { %v2109_v53 = vpop.eup %2108  ;;  %v1646_v54 = vadd.f32 1e-05, %v1644_v52 }
 0x6c5   :  { %v1648_v56 = vmul.f32 %v2109_v53, %v1645_v0  ;;  %vm1654_vm13 = vweird.f32 %v2109_v53 }
 0x6c6   :  { %2110 = vrsqrt.f32 %v1646_v54  ;;  %vm1655_vm15 = vmor %vm1653_vm14, %vm1654_vm13  ;;  %vm1663_vm2 = vweird.f32 %v1646_v54 }
 0x6c7   :  { %v1649_v62 = vmul.f32 %v2109_v53, %v1648_v56  ;;  %v1972_v56 = vld [vmem:[%s2843_s11 + $0x8] sm:$0xff] }
 0x6c8   :  { %1858 = vmatpush.bf16.msra.mxu3 %v1972_v56 }
 0x6c9   :  { %v1650_v1 = vmul.f32 0.5, %v1649_v62 }
 0x6cb   :  { %v1651_v15 = vsub.f32 1.5, %v1650_v1 }
 0x6cc   :  { %v2111_v2 = vpop.eup %2110 }
 0x6cd   :  { %v1652_v58 = vmul.f32 %v2109_v53, %v1651_v15  ;;  %v1658_v16 = vmul.f32 %v2111_v2, %v1646_v54  ;;  %vm1664_vm1 = vweird.f32 %v2111_v2 }
 0x6ce   :  { %vm1665_vm3 = vmor %vm1663_vm2, %vm1664_vm1 }
 0x6cf   :  { %v1659_v57 = vmul.f32 %v2111_v2, %v1658_v16  ;;  %v1656_v61 = vsel %vm1655_vm15, %v2109_v53, %v1652_v58  ;;  %v1971_v16 = vld [vmem:[%s2843_s11] sm:$0xff] }
 0x6d0   :  { %v1667_v8 = vmul.f32 %v1656_v61, %v1633_v44  ;;  %1859 = vmatpush.bf16.msra.mxu3 %v1971_v16 }
 0x6d1   :  { %v1660_v3 = vmul.f32 0.5, %v1659_v57 }
 0x6d2   :  { %v1672_v14 = vmul.f32 %v2066_v10, %v1667_v8 }
 0x6d3   :  { %v1661_v6 = vsub.f32 1.5, %v1660_v3 }
 0x6d4   :  { %v1677_v22 = vadd.f32 %v2067_v11, %v1672_v14 }
 0x6d5   :  { %v1662_v9 = vmul.f32 %v2111_v2, %v1661_v6 }
 0x6d7   :  { %v1666_v17 = vsel %vm1665_vm3, %v2111_v2, %v1662_v9 }
 0x6d8   :  { %v1668_v20 = vmul.f32 %v1666_v17, %v1634_v47 }
 0x6da   :  { %v1673_v21 = vmul.f32 %v2066_v10, %v1668_v20 }
 0x6dc   :  { %v1678_v23 = vadd.f32 %v2067_v11, %v1673_v21 }
 0x6de   :  { %v1679_v24 = vpack.c.bf16 %v1678_v23, %v1677_v22 }
 0x6e0   :  { %1930 = vmatmul.msk.bf16.vlgmr.msra.gmra.mxu2 %vm84_vm0, %v1679_v24 }
 0x763   :  { %v1707_v26 = vpop.f32.mrf.mxu2 }
 0x764   :  { %v2779_v55 = vadd.f32 %v2068_v25, %v1707_v26 }
 0x766   :  { %v2785_v59 = vmul.f32 0.70710677, %v2779_v55 }
 0x768   :  { %v1716_v29 = vmul.f32 %v2785_v59, %v2785_v59 }
 0x76a   :  { %v1717_v18 = vmin.f32 %v1716_v29, 16.0 }
 0x76b   :  { %v1709_v12 = vpop.f32.mrf.mxu2 }
 0x76c   :  { %v1718_v31 = vmul.f32 2.1237322e-06, %v1717_v18  ;;  %v1729_v32 = vmul.f32 3.8918573e-05, %v1717_v18  ;;  %v2792_v33 = vadd.f32 %v2068_v25, %v1709_v12 }
 0x76e   :  { %v1719_v60 = vadd.f32 0.00028619796, %v1718_v31  ;;  %v1730_v35 = vadd.f32 0.001143296, %v1729_v32  ;;  %v2798_v19 = vmul.f32 0.70710677, %v2792_v33 }
 0x770   :  { %v1731_v37 = vmul.f32 %v1730_v35, %v1717_v18  ;;  %v1756_v38 = vmul.f32 %v2798_v19, %v2798_v19  ;;  %v1720_v7 = vmul.f32 %v1719_v60, %v1717_v18 }
 0x772   :  { %v1732_v40 = vadd.f32 0.014752088, %v1731_v37  ;;  %v1757_v42 = vmin.f32 %v1756_v38, 16.0  ;;  %v1721_v41 = vadd.f32 0.0036580483, %v1720_v7 }
 0x774   :  { %v1733_v43 = vmul.f32 %v1732_v40, %v1717_v18  ;;  %v1758_v44 = vmul.f32 2.1237322e-06, %v1757_v42  ;;  %v1769_v13 = vmul.f32 3.8918573e-05, %v1757_v42  ;;  %v1722_v0 = vmul.f32 %v1721_v41, %v1717_v18 }
 0x776   :  { %v1734_v46 = vadd.f32 0.112945676, %v1733_v43  ;;  %v1759_v47 = vadd.f32 0.00028619796, %v1758_v44  ;;  %v1770_v63 = vadd.f32 0.001143296, %v1769_v13 }
 0x777   :  { %v1723_v62 = vadd.f32 0.05243302, %v1722_v0 }
 0x778   :  { %v1735_v27 = vmul.f32 %v1734_v46, %v1717_v18  ;;  %v1760_v48 = vmul.f32 %v1759_v47, %v1757_v42  ;;  %v1771_v4 = vmul.f32 %v1770_v63, %v1757_v42  ;;  %v1712_v46 = vmul.f32 0.5, %v2779_v55 }
 0x779   :  { %v1724_v57 = vmul.f32 %v1723_v62, %v1717_v18  ;;  %v1713_v47 = vmul.f32 0.5, %v2792_v33 }
 0x77a   :  { %v1736_v50 = vadd.f32 0.4994258, %v1735_v27  ;;  %v1761_v51 = vadd.f32 0.0036580483, %v1760_v48  ;;  %v1772_v52 = vadd.f32 0.014752088, %v1771_v4 }
 0x77b   :  { %v1725_v8 = vadd.f32 0.18741608, %v1724_v57 }
 0x77c   :  { %v1737_v53 = vmul.f32 %v1736_v50, %v1717_v18  ;;  %v1773_v54 = vmul.f32 %v1772_v52, %v1757_v42  ;;  %v1762_v15 = vmul.f32 %v1761_v51, %v1757_v42 }
 0x77d   :  { %v1726_v20 = vmul.f32 %v1725_v8, %v1717_v18 }
 0x77e   :  { %v1738_v1 = vadd.f32 1.0, %v1737_v53  ;;  %v1774_v2 = vadd.f32 0.112945676, %v1773_v54  ;;  %v1763_v61 = vadd.f32 0.05243302, %v1762_v15 }
 0x77f   :  { %v1727_v26 = vadd.f32 1.1283791, %v1726_v20 }
 0x780   :  { %2112 = vrcp.f32 %v1738_v1  ;;  %v1775_v58 = vmul.f32 %v1774_v2, %v1757_v42  ;;  %v1764_v17 = vmul.f32 %v1763_v61, %v1757_v42  ;;  %v1750_v22 = vand.u32 2147483648, %v1738_v1 }
 0x781   :  { %v1748_v24 = vand.u32 2147483647, %v1738_v1  ;;  %vm1744_vm5 = vweird.f32 %v1738_v1  ;;  %v1728_v34 = vmul.f32 %v1727_v26, %v2785_v59 }
 0x782   :  { %v1776_v3 = vadd.f32 0.4994258, %v1775_v58  ;;  %v1765_v23 = vadd.f32 0.18741608, %v1764_v17  ;;  %v1751_v30 = vor.u32 1.1754944e-38, %v1750_v22 }
 0x783   :  { %vm1749_vm7 = vcmp.eq.f32.partialorder %v1748_v24, 8.507059e+37 }
 0x784   :  { %v1777_v6 = vmul.f32 %v1776_v3, %v1757_v42  ;;  %v1766_v12 = vmul.f32 %v1765_v23, %v1757_v42 }
 0x786   :  { %v2113_v10 = vpop.eup %2112  ;;  %v1778_v11 = vadd.f32 1.0, %v1777_v6  ;;  %v1767_v18 = vadd.f32 1.1283791, %v1766_v12 }
 0x787   :  { %v1740_v9 = vmul.f32 %v2113_v10, %v1738_v1  ;;  %vm1745_vm4 = vweird.f32 %v2113_v10 }
 0x788   :  { %2114 = vrcp.f32 %v1778_v11  ;;  %vm1746_vm6 = vmor %vm1744_vm5, %vm1745_vm4  ;;  %v1790_v35 = vand.u32 2147483648, %v1778_v11  ;;  %v1788_v5 = vand.u32 2147483647, %v1778_v11  ;;  %vm1784_vm9 = vweird.f32 %v1778_v11 }
 0x789   :  { %v1741_v14 = vsub.f32 1.0, %v1740_v9  ;;  %v1768_v44 = vmul.f32 %v1767_v18, %v2798_v19 }
 0x78a   :  { %v1791_v40 = vor.u32 1.1754944e-38, %v1790_v35  ;;  %vm1789_vm11 = vcmp.eq.f32.partialorder %v1788_v5, 8.507059e+37 }
 0x78b   :  { %v1742_v21 = vmul.f32 %v2113_v10, %v1741_v14 }
 0x78d   :  { %v1743_v25 = vadd.f32 %v2113_v10, %v1742_v21 }
 0x78e   :  { %v2115_v28 = vpop.eup %2114 }
 0x78f   :  { %v1747_v29 = vsel %vm1746_vm6, %v2113_v10, %v1743_v25  ;;  %v1780_v31 = vmul.f32 %v2115_v28, %v1778_v11  ;;  %vm1785_vm8 = vweird.f32 %v2115_v28 }
 0x790   :  { %v1752_v32 = vsel %vm1749_vm7, %v1751_v30, %v1747_v29  ;;  %vm1786_vm10 = vmor %vm1784_vm9, %vm1785_vm8 }
 0x791   :  { %v1781_v60 = vsub.f32 1.0, %v1780_v31  ;;  %v1753_v37 = vmul.f32 %v1752_v32, %v1728_v34 }
 0x793   :  { %v1782_v38 = vmul.f32 %v2115_v28, %v1781_v60  ;;  %v1931_v43 = vclamps-f32 %v1753_v37, 1.0 }
 0x795   :  { %v1783_v7 = vadd.f32 %v2115_v28, %v1782_v38  ;;  %v1796_v41 = vadd.f32 1.0, %v1931_v43 }
 0x797   :  { %v1787_v42 = vsel %vm1786_vm10, %v2115_v28, %v1783_v7  ;;  %v1798_v27 = vmul.f32 %v1796_v41, %v1712_v46 }
 0x798   :  { %v1792_v13 = vsel %vm1789_vm11, %v1791_v40, %v1787_v42 }
 0x799   :  { %v1793_v45 = vmul.f32 %v1792_v13, %v1768_v44 }
 0x79b   :  { %v1932_v59 = vclamps-f32 %v1793_v45, 1.0 }
 0x79d   :  { %v1797_v63 = vadd.f32 1.0, %v1932_v59 }
 0x79f   :  { %v1799_v48 = vmul.f32 %v1797_v63, %v1713_v47 }
 0x7a1   :  { %v1800_v4 = vpack.c.bf16 %v1799_v48, %v1798_v27 }
 0x7a3   :  { %1860 = vmatmul.bf16.vlgmr.msra.gmra.mxu3 %v1800_v4 }
 0x826   :  { %v1861_v19 = vpop.f32.mrf.mxu3 }
 0x827   :  { %v1862_v0 = vadd.f32 %v2069_v49, %v1861_v19 }
 0x829   :  { %v1866_v50 = vadd.f32 %v1862_v0, %v2744_v36 }
 0x82b   :  { %1868 = vst.msk [vmem:[#allocation2] sm:$0xff] %vm84_vm0, %v1866_v50 }
 0x82e   :  { %v1863_v55 = vpop.f32.mrf.mxu3 }
 0x82f   :  { %v1864_v33 = vadd.f32 %v2069_v49, %v1863_v55 }
 0x831   :  { %v1867_v51 = vadd.f32 %v1864_v33, %v2751_v39 }
 0x833   :  { %1869 = vst.msk [vmem:[#allocation2 + $0x8] sm:$0xff] %vm84_vm0, %v1867_v51 }
 0x834   :  { %1882 = dma.vmem_to_hbm [thread:$0]  %s1875_s9, 256, %s1877_s17, [#allocation3], %s2156_s12, %s2156_s12, %s2154_s25  }
 0x835   :  { %2142 = dma.done.wait [#allocation3], 256  }
 0x836   :  { %2143 = vsyncadd [#allocation3], 4294967040 }
 0x837   :  { %1887 = vsyncpa [#allocation3], 1 }

// kernel: tpu_custom_call.1
= control target key start
LH: loop header
LB: loop body
LE: loop exit
PB: predicated region body
PF: predicated region fallthrough
CT: control target
= control target key end

     0   :  { %s1617_s0 = inlined_call_operand.vmem [shape: f32[2,8,32], index: 0, kind: input, shape index: {}]   ;;  %s1618_s1 = inlined_call_operand.vmem [shape: f32[1,32], index: 1, kind: input, shape index: {}]   ;;  %s1619_s2 = inlined_call_operand.vmem [shape: f32[1,32], index: 2, kind: input, shape index: {}]   ;;  %s1620_s3 = inlined_call_operand.vmem [shape: bf16[32,96], index: 3, kind: input, shape index: {}]   ;;  %s1621_s4 = inlined_call_operand.vmem [shape: f32[1,96], index: 4, kind: input, shape index: {}]   ;;  %s1622_s5 = inlined_call_operand.vmem [shape: bf16[32,32], index: 5, kind: input, shape index: {}]   ;;  %s1623_s6 = inlined_call_operand.vmem [shape: f32[1,32], index: 6, kind: input, shape index: {}]   ;;  %s1624_s7 = inlined_call_operand.vmem [shape: f32[1,32], index: 7, kind: input, shape index: {}]   ;;  %s1625_s8 = inlined_call_operand.vmem [shape: f32[1,32], index: 8, kind: input, shape index: {}]   ;;  %s1626_s9 = inlined_call_operand.vmem [shape: bf16[32,128], index: 9, kind: input, shape index: {}]   ;;  %s1627_s10 = inlined_call_operand.vmem [shape: f32[1,128], index: 10, kind: input, shape index: {}]   ;;  %s1628_s11 = inlined_call_operand.vmem [shape: bf16[128,32], index: 11, kind: input, shape index: {}]   ;;  %s1629_s12 = inlined_call_operand.vmem [shape: f32[1,32], index: 12, kind: input, shape index: {}]   ;;  %s1630_s13 = inlined_call_operand.hbm [shape: f32[2,8,32], index: 13, kind: output, shape index: {}]  }
   0x1   :  { %1631 = sst [smem:[#allocation5_spill]] %s1617_s0 }
   0x2   :  { %1632 = sst [smem:[#allocation6_spill]] %s1618_s1 }
   0x3   :  { %1633 = sst [smem:[#allocation7_spill]] %s1619_s2 }
   0x4   :  { %1634 = sst [smem:[#allocation8_spill]] %s1620_s3 }
   0x5   :  { %18 = vsyncpa [#allocation3], 0 }
   0x6   :  { %20 = vsyncpa [#allocation3 + $0x1], 0  ;;  %s1401_s25 = smov 0   ;;  %s1403_s26 = smov 0  }
   0x7   :  { %s1405_s27 = smov 0   ;;  %s1407_s28 = smov 0  }
   0x8 LB: > { %s1422_s29 = sadd.s32 4294967295, %s1320_s28   ;;  %s1086_s30 = sadd.s32 4294967294, %s1320_s28   ;;  %s1320_s28 = sphi %s1407_s28, %s1644_s28   ;;  %s1316_s27 = sphi %s1405_s27, %s1643_s27   ;;  %s1312_s26 = sphi %s1403_s26, %s1642_s26   ;;  %s1308_s25 = sphi %s1401_s25, %s1641_s25  }
   0x9   : > { %s1426_s14 = sadd.s32 1, %s1320_s28   ;;  %s311_s15 = sadd.s32 1, %s1316_s27 }
   0xa   : > { %s308_s16 = ssub.s32 %s1320_s28, %s1426_s14  ;;  %p321_p0 = scmp.ne.s32.totalorder %s1316_s27, %s1312_s26 }
   0xb   : > { %p309_p1 = scmp.eq.s32.totalorder %s308_s16, 0  ;;  %p322_p2 = scmp.eq.s32.totalorder %s1422_s29, 1 }
   0xc   : > { %p327_p3 = scmp.ne.s32.totalorder %s1312_s26, %s1308_s25  ;;  %p328_p4 = scmp.eq.s32.totalorder %s1086_s30, 1 }
   0xd   : > { %s1437_s17 = scalar_select %p309_p1, %s1316_s27, %s311_s15  }
   0xe   : > { %p1439_p5 = por %p322_p2, %p321_p0  ;;  %p1443_p6 = por %p328_p4, %p327_p3 }
   0xf   : > { %p1089_p7 = scmp.ge.s32.totalorder %s1320_s28, 1  ;;  %p389_p8 = scmp.lt.s32.totalorder %s1320_s28, 3 }
  0x11   : > { %p390_p9 = pnand %p1089_p7, %p389_p8 }
  0x12   : > { %p432_p10 = scmp.lt.s32.totalorder (!%p390_p9), %s1422_s29, 1  ;;  %s1637_s0 = sld [smem:[#allocation5_spill]] (!%p390_p9) }
  0x13   : > { %393 = sbr.rel (%p390_p9) target bundleno = 2025 (0x7e9), region = 72  ;;  %s1638_s3 = sld [smem:[#allocation8_spill]] (!%p390_p9) }
  0x14   : > { %s1639_s1 = sld [smem:[#allocation6_spill]] (!%p390_p9)  ;;  %s1323_s16 = smov (!%p390_p9), 104  }
  0x15   : > { %s1640_s2 = sld [smem:[#allocation7_spill]] (!%p390_p9)  ;;  %s1326_s22 = smov (!%p390_p9), 96  }
  0x16   : > { %s1327_s23 = smov (!%p390_p9), 64   ;;  %s1329_s30 = smov (!%p390_p9), 24  }
  0x17   : > { %s1330_s15 = smov (!%p390_p9), 16  }
  0x18   : > { %s433_s20 = scalar_select %p432_p10, %s1422_s29, 1  ;;  %vm474_vm0 = vcmask 261120   ;;  %v1322_v2 = vmov 32.0   ;;  %v1228_v32 = vld [vmem:[%s1621_s4] ss:$0 sm:$0xff]  ;;  %vm563_vm5 = vcmask 64512  }
  0x19   : > { %1234 = vrcp.f32 %v1322_v2  ;;  %v1165_v14 = vld [vmem:[%s1638_s3 + $0x8] sm:$0xff]  ;;  %v1164_v15 = vld [vmem:[%s1638_s3] sm:$0xff]  ;;  %vm708_vm6 = vcmask 1043456   ;;  %vm801_vm7 = vcmask 130048   ;;  %vm803_vm8 = vcmask 195584  }
  0x1a   : > { %s1091_s21 = sshll.u32 %s433_s20, 3  ;;  %537 = vmatpush.bf16.msra.mxu0 %v1165_v14  ;;  %v1226_v25 = vld [vmem:[%s1639_s1] ss:$0 sm:$0xff]  ;;  %s1324_s20 = smov 120  }
  0x1b   : > { %s435_s24 = scalar_lea.vmem %s1637_s0, %s1091_s21  ;;  %v1227_v28 = vld [vmem:[%s1640_s2] ss:$0 sm:$0xff]  ;;  %s1325_s21 = smov 112  }
  0x1c   : > { %v1454_v0 = vld [vmem:[%s435_s24] sm:$0xff]  ;;  %s1328_s24 = smov 8  }
  0x1d   : > { %v475_v1 = vsel %vm474_vm0, %v1454_v0, 0.0 }
  0x1e   : > { %476 = vadd.xlane.f32.xlu0 %v475_v1  ;;  %538 = vmatpush.bf16.msra.mxu0 %v1164_v15 }
  0x1f   : > { %v1235_v3 = vpop.eup %1234 }
  0x20   : > { %v479_v4 = vmul.f32 32.0, %v1235_v3  ;;  %vm483_vm1 = vweird.f32 %v1235_v3 }
  0x22   : > { %v480_v5 = vsub.f32 1.0, %v479_v4 }
  0x24   : > { %v481_v6 = vmul.f32 %v1235_v3, %v480_v5 }
  0x26   : > { %v482_v7 = vadd.f32 %v1235_v3, %v481_v6 }
  0x28   : > { %v1458_v8 = vsel %vm483_vm1, %v1235_v3, %v482_v7 }
  0x91   : > { %v477_v9 = vpop.xlane.xlu0 %476 }
  0x92   : > { %v485_v10 = vmul.f32 %v1458_v8, %v477_v9 }
  0x94   : > { %v486_v11 = vsub.f32 %v1454_v0, %v485_v10 }
  0x96   : > { %v487_v12 = vmul.f32 %v486_v11, %v486_v11 }
  0x98   : > { %v488_v13 = vsel %vm474_vm0, %v487_v12, 0.0 }
  0x99   : > { %489 = vadd.xlane.f32.xlu0 %v488_v13 }
 0x10c   : > { %v490_v16 = vpop.xlane.xlu0 %489 }
 0x10d   : > { %v491_v17 = vmul.f32 %v490_v16, %v1458_v8 }
 0x10f   : > { %v492_v18 = vadd.f32 1e-05, %v491_v17 }
 0x111   : > { %1236 = vrsqrt.f32 %v492_v18  ;;  %vm499_vm3 = vweird.f32 %v492_v18 }
 0x117   : > { %v1237_v19 = vpop.eup %1236 }
 0x118   : > { %v494_v20 = vmul.f32 %v1237_v19, %v492_v18  ;;  %vm500_vm2 = vweird.f32 %v1237_v19 }
 0x119   : > { %vm501_vm4 = vmor %vm499_vm3, %vm500_vm2 }
 0x11a   : > { %v495_v21 = vmul.f32 %v1237_v19, %v494_v20 }
 0x11c   : > { %v496_v22 = vmul.f32 0.5, %v495_v21 }
 0x11e   : > { %v497_v23 = vsub.f32 1.5, %v496_v22 }
 0x120   : > { %v498_v24 = vmul.f32 %v1237_v19, %v497_v23 }
 0x122   : > { %v502_v26 = vsel %vm501_vm4, %v1237_v19, %v498_v24 }
 0x123   : > { %v503_v27 = vmul.f32 %v502_v26, %v486_v11 }
 0x125   : > { %v507_v29 = vmul.f32 %v1226_v25, %v503_v27 }
 0x127   : > { %v511_v30 = vadd.f32 %v1227_v28, %v507_v29 }
 0x129   : > { %v512_v31 = vpack.c.bf16 %v511_v30, %v511_v30 }
 0x12b   : > { %1100 = vmatmul.msk.bf16.vlgmr.msra.gmra.mxu0 %vm474_vm0, %v512_v31 }
 0x1a8   : > { %v540_v33 = vpop.f32.mrf.mxu0 }
 0x1a9   : > { %v541_v34 = vadd.f32 %v1228_v32, %v540_v33 }
 0x1ab   : > { %551 = vrot.lane.b32.xlu2 %v541_v34, %s1323_s16  ;;  %545 = vrot.lane.b32.xlu1 %v541_v34, %s1324_s20  ;;  %v554_v44 = vpack.c.bf16 %v541_v34, %v541_v34  ;;  %s429_s16 = sand.u32 1, %s1312_s26  }
 0x1ac   : > { %s1090_s20 = sshll.u32 %s429_s16, 3 }
 0x1ad   : > { %v559_v47 = vunpack.c.l.b16 %v554_v44  ;;  %s431_s0 = scalar_lea.vmem [#allocation2], %s1090_s20  ;;  %s1278_s20 = scalar_lea.hbm %s1630_s13, 16 }
 0x1ae   : > { %s1024_s1 = sshll.u32 %s431_s0, 4  ;;  %s1025_s1 = int_to_ptr.vmem [resolvable:$true] %s1024_s1 }
 0x1af   : > { %v1485_v50 = vpack.c.b16 %v559_v47, %v559_v47 }
 0x1b0   : > { %v542_v35 = vpop.f32.mrf.mxu0 }
 0x1b3   : > { %548 = vrot.lane.b32.xlu1 %v541_v34, %s1325_s21  ;;  %s1161_s21 = sshll.u32 %s1422_s29, 3  ;;  %s1012_s29 = scalar_lea.sflag [#allocation3], %s429_s16 }
 0x205   : > { %v552_v36 = vpop.permute.xlu2 %551 }
 0x206   : > { %v557_v37 = vpack.c.bf16 %v552_v36, %v552_v36 }
 0x208   : > { %v632_v38 = vunpack.c.l.b16 %v557_v37 }
 0x20a   : > { %v1480_v39 = vpack.c.b16 %v632_v38, %v632_v38 }
 0x20c   : > { %634 = vrot.lane.b32.xlu1 %v1480_v39, %s1326_s22 }
 0x21d   : > { %v546_v40 = vpop.permute.xlu1 %545 }
 0x21e   : > { %v555_v41 = vpack.c.bf16 %v546_v40, %v546_v40 }
 0x220   : > { %v584_v42 = vunpack.c.l.b16 %v555_v41 }
 0x222   : > { %v585_v43 = vpack.c.b16 %v584_v42, %v584_v42 }
 0x224   : > { %586 = vrot.lane.b32.xlu2 %v585_v43, %s1326_s22 }
 0x225   : > { %v549_v45 = vpop.permute.xlu1 %548 }
 0x226   : > { %v556_v46 = vpack.c.bf16 %v549_v45, %v549_v45 }
 0x228   : > { %v608_v48 = vunpack.c.l.b16 %v556_v46 }
 0x22a   : > { %v1483_v49 = vpack.c.b16 %v608_v48, %v608_v48 }
 0x22c   : > { %610 = vrot.lane.b32.xlu0 %v1483_v49, %s1326_s22  ;;  %561 = vrot.lane.b32.xlu2 %v1485_v50, %s1326_s22 }
 0x27e   : > { %v587_v51 = vpop.permute.xlu2 %586  ;;  %v635_v52 = vpop.permute.xlu1 %634 }
 0x27f   : > { %v592_v53 = vsel %vm563_vm5, %v587_v51, 0  ;;  %v640_v54 = vsel %vm563_vm5, %v635_v52, 0 }
 0x280   : > { %601 = vmatpush.bf16.xpose.msra.mxu2 %v592_v53  ;;  %649 = vmatpush.bf16.xpose.msrb.mxu0 %v640_v54 }
 0x286   : > { %v562_v55 = vpop.permute.xlu2 %561 }
 0x287   : > { %1102 = vmatmul.msk.bf16.vlgmr.msra.gmra.mxu2 %vm563_vm5, %v555_v41  ;;  %1104 = vmatmul.msk.bf16.vlgmr.msrb.gmra.mxu0 %vm563_vm5, %v557_v37  ;;  %v568_v56 = vsel %vm563_vm5, %v562_v55, 0 }
 0x288   : > { %577 = vmatpush.bf16.xpose.msra.mxu1 %v568_v56 }
 0x28f   : > { %1101 = vmatmul.msk.bf16.vlgmr.msra.gmra.mxu1 %vm563_vm5, %v554_v44 }
 0x29e   : > { %v611_v57 = vpop.permute.xlu0 %610 }
 0x29f   : > { %v616_v58 = vsel %vm563_vm5, %v611_v57, 0 }
 0x2a0   : > { %625 = vmatpush.bf16.xpose.msra.mxu3 %v616_v58 }
 0x2a7   : > { %1103 = vmatmul.msk.bf16.vlgmr.msra.gmra.mxu3 %vm563_vm5, %v556_v46 }
 0x304   : > { %v651_v59 = vpop.f32.mrf.mxu0 }
 0x305   : > { %v664_v60 = vsel %vm563_vm5, %v651_v59, -inf }
 0x306   : > { %665 = vmax.xlane.f32.xlu0 %v664_v60 }
 0x30a   : > { %v603_v61 = vpop.f32.mrf.mxu2 }
 0x30b   : > { %v658_v62 = vsel %vm563_vm5, %v603_v61, -inf }
 0x30c   : > { %659 = vmax.xlane.f32.xlu1 %v658_v62  ;;  %v579_v63 = vpop.f32.mrf.mxu1  ;;  %v653_v1 = vpop.f32.mrf.mxu0  ;;  %v1166_v62 = vld [vmem:[%s1622_s5] sm:$0xff] }
 0x30d   : > { %v655_v7 = vsel %vm563_vm5, %v579_v63, -inf }
 0x312   : > { %v605_v2 = vpop.f32.mrf.mxu2 }
 0x314   : > { %v581_v3 = vpop.f32.mrf.mxu1 }
 0x31a   : > { %725 = vrot.lane.b32.xlu0 %v585_v43, %s1327_s23 }
 0x32a   : > { %v627_v4 = vpop.f32.mrf.mxu3 }
 0x32b   : > { %v661_v5 = vsel %vm563_vm5, %v627_v4, -inf }
 0x32c   : > { %662 = vmax.xlane.f32.xlu2 %v661_v5 }
 0x332   : > { %v629_v6 = vpop.f32.mrf.mxu3 }
 0x334   : > { %656 = vmax.xlane.f32.xlu2 %v655_v7  ;;  %v1229_v7 = vld [vmem:[%s1623_s6] ss:$0 sm:$0xff] }
 0x379   : > { %v666_v9 = vpop.xlane.xlu0 %665 }
 0x37a   : > { %v670_v10 = vsub.f32 %v651_v59, %v666_v9 }
 0x37c   : > { %v677_v11 = vmul.f32 1.442695, %v670_v10 }
 0x37e   : > { %1238 = vpow2.f32 %v677_v11 }
 0x37f   : > { %v660_v12 = vpop.xlane.xlu1 %659 }
 0x380   : > { %v668_v13 = vsub.f32 %v603_v61, %v660_v12  ;;  %v1167_v61 = vld [vmem:[%s1622_s5 + $0x8] sm:$0xff] }
 0x382   : > { %v673_v14 = vmul.f32 1.442695, %v668_v13 }
 0x384   : > { %v1239_v15 = vpop.eup %1238  ;;  %1240 = vpow2.f32 %v673_v14 }
 0x385   : > { %v688_v16 = vsel %vm563_vm5, %v1239_v15, 0.0 }
 0x386   : > { %689 = vadd.xlane.f32.xlu1 %v688_v16 }
 0x38a   : > { %v1241_v17 = vpop.eup %1240 }
 0x38b   : > { %v682_v20 = vsel %vm563_vm5, %v1241_v17, 0.0 }
 0x38c   : > { %v726_v18 = vpop.permute.xlu0 %725 }
 0x38d   : > { %v731_v19 = vsel %vm708_vm6, %v726_v18, 0 }
 0x38e   : > { %740 = vmatpush.bf16.msrb.mxu2 %v731_v19  ;;  %683 = vadd.xlane.f32.xlu1 %v682_v20  ;;  %v1169_v19 = vld [vmem:[%s1626_s9 + $0x8] sm:$0xff] }
 0x392   : > { %893 = vmatpush.bf16.msra.mxu2 %v1169_v19 }
 0x39f   : > { %v663_v21 = vpop.xlane.xlu2 %662 }
 0x3a0   : > { %v669_v22 = vsub.f32 %v627_v4, %v663_v21 }
 0x3a2   : > { %v675_v23 = vmul.f32 1.442695, %v669_v22 }
 0x3a4   : > { %1242 = vpow2.f32 %v675_v23 }
 0x3a7   : > { %767 = vrot.lane.b32.xlu1 %v1480_v39, %s1327_s23  ;;  %v657_v24 = vpop.xlane.xlu2 %656 }
 0x3a8   : > { %v667_v25 = vsub.f32 %v579_v63, %v657_v24 }
 0x3aa   : > { %v1243_v26 = vpop.eup %1242  ;;  %v671_v27 = vmul.f32 1.442695, %v667_v25 }
 0x3ab   : > { %v685_v28 = vsel %vm563_vm5, %v1243_v26, 0.0 }
 0x3ac   : > { %1244 = vpow2.f32 %v671_v27  ;;  %686 = vadd.xlane.f32.xlu2 %v685_v28 }
 0x3b2   : > { %v1245_v29 = vpop.eup %1244 }
 0x3b3   : > { %v679_v30 = vsel %vm563_vm5, %v1245_v29, 0.0 }
 0x3b4   : > { %680 = vadd.xlane.f32.xlu0 %v679_v30 }
 0x3c4   : > { %746 = vrot.lane.b32.xlu2 %v1483_v49, %s1327_s23 }
 0x3cc   : > { %703 = vrot.lane.b32.xlu2 %v1485_v50, %s1327_s23 }
 0x3f9   : > { %v690_v31 = vpop.xlane.xlu1 %689 }
 0x401   : > { %v684_v32 = vpop.xlane.xlu1 %683 }
 0x402   : > { %1246 = vrcp.f32 %v684_v32 }
 0x403   : > { %1248 = vrcp.f32 %v690_v31 }
 0x408   : > { %v1247_v33 = vpop.eup %1246 }
 0x409   : > { %v696_v34 = vmul.f32 %v1247_v33, %v1241_v17  ;;  %v1249_v36 = vpop.eup %1248 }
 0x40a   : > { %v698_v37 = vmul.f32 %v1249_v36, %v1239_v15  ;;  %v1176_v36 = vld [vmem:[%s1628_s11 + $0x30] sm:$0xff] }
 0x40b   : > { %v700_v35 = vpack.c.bf16 %v696_v34, %v696_v34 }
 0x40c   : > { %v702_v40 = vpack.c.bf16 %v698_v37, %v698_v37  ;;  %v1232_v37 = vld [vmem:[%s1627_s10] ss:$0 sm:$0xff] }
 0x40d   : > { %1106 = vmatmul.msk.bf16.vlgmr.msrb.gmra.mxu2 %vm563_vm5, %v700_v35  ;;  %v1177_v35 = vld [vmem:[%s1628_s11 + $0x38] sm:$0xff] }
 0x419   : > { %v768_v38 = vpop.permute.xlu1 %767 }
 0x41a   : > { %v773_v39 = vsel %vm708_vm6, %v768_v38, 0 }
 0x41b   : > { %782 = vmatpush.bf16.msra.mxu0 %v773_v39  ;;  %v1175_v39 = vld [vmem:[%s1628_s11 + $0x28] sm:$0xff] }
 0x41e   : > { %1108 = vmatmul.msk.bf16.vlgmr.msra.gmra.mxu0 %vm563_vm5, %v702_v40 }
 0x41f   : > { %v687_v41 = vpop.xlane.xlu2 %686 }
 0x420   : > { %1250 = vrcp.f32 %v687_v41 }
 0x426   : > { %v1251_v42 = vpop.eup %1250 }
 0x427   : > { %v697_v43 = vmul.f32 %v1251_v42, %v1243_v26  ;;  %v681_v44 = vpop.xlane.xlu0 %680  ;;  %v747_v45 = vpop.permute.xlu2 %746  ;;  %v1174_v42 = vld [vmem:[%s1628_s11 + $0x20] sm:$0xff] }
 0x428   : > { %1252 = vrcp.f32 %v681_v44  ;;  %v752_v46 = vsel %vm708_vm6, %v747_v45, 0 }
 0x429   : > { %761 = vmatpush.bf16.msrb.mxu3 %v752_v46  ;;  %v701_v47 = vpack.c.bf16 %v697_v43, %v697_v43  ;;  %v1173_v46 = vld [vmem:[%s1628_s11 + $0x18] sm:$0xff] }
 0x42c   : > { %1107 = vmatmul.msk.bf16.vlgmr.msrb.gmra.mxu3 %vm563_vm5, %v701_v47 }
 0x42d   : > { %996 = vmatpush.bf16.msra.mxu3 %v1177_v35 }
 0x42e   : > { %v1253_v48 = vpop.eup %1252 }
 0x42f   : > { %v695_v49 = vmul.f32 %v1253_v48, %v1245_v29  ;;  %v704_v50 = vpop.permute.xlu2 %703  ;;  %v1230_v29 = vld [vmem:[%s1624_s7] ss:$0 sm:$0xff] }
 0x430   : > { %v710_v51 = vsel %vm708_vm6, %v704_v50, 0 }
 0x431   : > { %v699_v52 = vpack.c.bf16 %v695_v49, %v695_v49  ;;  %719 = vmatpush.bf16.msrb.mxu1 %v710_v51  ;;  %997 = vmatpush.bf16.msra.mxu3 %v1176_v36  ;;  %v1172_v51 = vld [vmem:[%s1628_s11 + $0x10] sm:$0xff] }
 0x434   : > { %1105 = vmatmul.msk.bf16.vlgmr.msrb.gmra.mxu1 %vm563_vm5, %v699_v52 }
 0x435   : > { %830 = vmatpush.bf16.msra.mxu1 %v1167_v61  ;;  %998 = vmatpush.bf16.msra.mxu3 %v1175_v39 }
 0x439   : > { %831 = vmatpush.bf16.msra.mxu1 %v1166_v62  ;;  %999 = vmatpush.bf16.msra.mxu3 %v1174_v42 }
 0x43d   : > { %1000 = vmatpush.bf16.msra.mxu3 %v1173_v46 }
 0x441   : > { %1001 = vmatpush.bf16.msra.mxu3 %v1172_v51 }
 0x490   : > { %v742_v53 = vpop.f32.mrf.mxu2 }
 0x491   : > { %789 = vrot.lane.b32.xlu1 %v742_v53, %s1328_s24 }
 0x498   : > { %v744_v54 = vpop.f32.mrf.mxu2 }
 0x49b   : > { %v784_v55 = vpop.f32.mrf.mxu0 }
 0x49c   : > { %797 = vrot.lane.b32.xlu1 %v784_v55, %s1329_s30 }
 0x4a3   : > { %v786_v56 = vpop.f32.mrf.mxu0 }
 0x4a4   : > { %v1171_v56 = vld [vmem:[%s1628_s11 + $0x8] sm:$0xff] }
 0x4a5   : > { %1002 = vmatpush.bf16.msra.mxu3 %v1171_v56 }
 0x4af   : > { %v763_v57 = vpop.f32.mrf.mxu3 }
 0x4b0   : > { %793 = vrot.lane.b32.xlu2 %v763_v57, %s1330_s15  ;;  %s1022_s15 = scalar_lea.hbm %s1630_s13, %s1161_s21 }
 0x4b1   : > { %v721_v58 = vpop.f32.mrf.mxu1  ;;  %s1026_s2 = sshll.u32 %s1022_s15, 4  ;;  %s1027_s2 = int_to_ptr.hbm [resolvable:$true] %s1026_s2 }
 0x4b2   : > { %s1272_s3 = sshra.s32 %s1027_s2, 4  ;;  %s1273_s3 = int_to_ptr.hbm [resolvable:$true] %s1272_s3 }
 0x4b3   : > { %s1274_s22 = scalar_lea.hbm %s1273_s3, 8  ;;  %p1279_p0 = scmp.lt.s32.totalorder %s1273_s3, %s1630_s13 }
 0x4b4   : > { %p1275_p11 = scmp.ne.s32.totalorder %s1273_s3, %s1274_s22  ;;  %p1280_p1 = scmp.lt.s32.totalorder %s1278_s20, %s1274_s22 }
 0x4b6   : > { %p1276_p12 = pnand %p1275_p11, %p1439_p5  ;;  %p1281_p2 = por %p1280_p1, %p1279_p0 }
 0x4b7   : > { %v765_v59 = vpop.f32.mrf.mxu3 }
 0x4b8   : > { %p1277_p13 = pneg %p1276_p12 }
 0x4b9   : > { %v723_v60 = vpop.f32.mrf.mxu1 }
 0x4ba   : > { %v1170_v60 = vld [vmem:[%s1628_s11] sm:$0xff]  ;;  %p1282_p3 = pnand %p1281_p2, %p1277_p13 }
 0x4bb   : > { %1003 = vmatpush.bf16.msra.mxu3 %v1170_v60 }
 0x503   : > { %v790_v63 = vpop.permute.xlu1 %789 }
 0x504   : > { %v800_v2 = vsel %vm563_vm5, %v721_v58, %v790_v63 }
 0x50a   : > { %v794_v1 = vpop.permute.xlu2 %793 }
 0x50b   : > { %v802_v3 = vsel %vm801_vm7, %v800_v2, %v794_v1 }
 0x50e   : > { %v798_v4 = vpop.permute.xlu1 %797 }
 0x50f   : > { %v804_v5 = vsel %vm803_vm8, %v802_v3, %v798_v4 }
 0x510   : > { %v805_v6 = vpack.c.bf16 %v804_v5, %v804_v5 }
 0x512   : > { %1117 = vmatmul.msk.bf16.vlgmr.msra.gmra.mxu1 %vm474_vm0, %v805_v6 }
 0x58f   : > { %v833_v9 = vpop.f32.mrf.mxu1 }
 0x590   : > { %v834_v10 = vadd.f32 %v1229_v7, %v833_v9 }
 0x592   : > { %v1532_v11 = vadd.f32 %v834_v10, %v1454_v0  ;;  %v1168_v0 = vld [vmem:[%s1626_s9] sm:$0xff] }
 0x593   : > { %894 = vmatpush.bf16.msra.mxu2 %v1168_v0 }
 0x594   : > { %v838_v12 = vsel %vm474_vm0, %v1532_v11, 0.0 }
 0x595   : > { %839 = vadd.xlane.f32.xlu2 %v838_v12 }
 0x597   : > { %v835_v13 = vpop.f32.mrf.mxu1 }
 0x608   : > { %v840_v14 = vpop.xlane.xlu2 %839 }
 0x609   : > { %v841_v15 = vmul.f32 %v840_v14, %v1458_v8 }
 0x60b   : > { %v842_v16 = vsub.f32 %v1532_v11, %v841_v15 }
 0x60d   : > { %v843_v17 = vmul.f32 %v842_v16, %v842_v16 }
 0x60f   : > { %v844_v18 = vsel %vm474_vm0, %v843_v17, 0.0 }
 0x610   : > { %845 = vadd.xlane.f32.xlu1 %v844_v18 }
 0x683   : > { %v846_v20 = vpop.xlane.xlu1 %845 }
 0x684   : > { %v847_v21 = vmul.f32 %v846_v20, %v1458_v8  ;;  %v1231_v8 = vld [vmem:[%s1625_s8] ss:$0 sm:$0xff] }
 0x686   : > { %v848_v22 = vadd.f32 1e-05, %v847_v21 }
 0x688   : > { %1254 = vrsqrt.f32 %v848_v22  ;;  %vm855_vm10 = vweird.f32 %v848_v22 }
 0x68e   : > { %v1255_v23 = vpop.eup %1254 }
 0x68f   : > { %v850_v24 = vmul.f32 %v1255_v23, %v848_v22  ;;  %vm856_vm9 = vweird.f32 %v1255_v23 }
 0x690   : > { %vm857_vm11 = vmor %vm855_vm10, %vm856_vm9 }
 0x691   : > { %v851_v25 = vmul.f32 %v1255_v23, %v850_v24 }
 0x693   : > { %v852_v26 = vmul.f32 0.5, %v851_v25  ;;  %v1233_v25 = vld [vmem:[%s1629_s12] ss:$0 sm:$0xff] }
 0x695   : > { %v853_v27 = vsub.f32 1.5, %v852_v26 }
 0x697   : > { %v854_v28 = vmul.f32 %v1255_v23, %v853_v27 }
 0x699   : > { %v858_v30 = vsel %vm857_vm11, %v1255_v23, %v854_v28 }
 0x69a   : > { %v859_v31 = vmul.f32 %v858_v30, %v842_v16 }
 0x69c   : > { %v863_v32 = vmul.f32 %v1230_v29, %v859_v31 }
 0x69e   : > { %v867_v33 = vadd.f32 %v1231_v8, %v863_v32 }
 0x6a0   : > { %v868_v34 = vpack.c.bf16 %v867_v33, %v867_v33 }
 0x6a2   : > { %1126 = vmatmul.msk.bf16.vlgmr.msra.gmra.mxu2 %vm474_vm0, %v868_v34 }
 0x725   : > { %v896_v38 = vpop.f32.mrf.mxu2 }
 0x726   : > { %v897_v40 = vadd.f32 %v1232_v37, %v896_v38 }
 0x728   : > { %v901_v41 = vmul.f32 0.70710677, %v897_v40  ;;  %v900_v21 = vmul.f32 0.5, %v897_v40 }
 0x72a   : > { %v902_v43 = vmul.f32 %v901_v41, %v901_v41 }
 0x72c   : > { %v903_v44 = vmin.f32 %v902_v43, 16.0 }
 0x72d   : > { %v898_v45 = vpop.f32.mrf.mxu2 }
 0x72e   : > { %v904_v47 = vmul.f32 2.1237322e-06, %v903_v44  ;;  %v915_v48 = vmul.f32 3.8918573e-05, %v903_v44 }
 0x730   : > { %v905_v49 = vadd.f32 0.00028619796, %v904_v47  ;;  %v916_v50 = vadd.f32 0.001143296, %v915_v48 }
 0x732   : > { %v906_v52 = vmul.f32 %v905_v49, %v903_v44  ;;  %v917_v53 = vmul.f32 %v916_v50, %v903_v44 }
 0x734   : > { %v918_v54 = vadd.f32 0.014752088, %v917_v53  ;;  %v907_v55 = vadd.f32 0.0036580483, %v906_v52 }
 0x736   : > { %v919_v57 = vmul.f32 %v918_v54, %v903_v44  ;;  %v908_v59 = vmul.f32 %v907_v55, %v903_v44 }
 0x738   : > { %v920_v58 = vadd.f32 0.112945676, %v919_v57  ;;  %v909_v63 = vadd.f32 0.05243302, %v908_v59 }
 0x73a   : > { %v921_v61 = vmul.f32 %v920_v58, %v903_v44  ;;  %v910_v3 = vmul.f32 %v909_v63, %v903_v44 }
 0x73c   : > { %v922_v62 = vadd.f32 0.4994258, %v921_v61  ;;  %v911_v4 = vadd.f32 0.18741608, %v910_v3 }
 0x73e   : > { %v923_v1 = vmul.f32 %v922_v62, %v903_v44  ;;  %v912_v6 = vmul.f32 %v911_v4, %v903_v44 }
 0x740   : > { %v924_v2 = vadd.f32 1.0, %v923_v1  ;;  %v913_v12 = vadd.f32 1.1283791, %v912_v6 }
 0x742   : > { %1256 = vrcp.f32 %v924_v2  ;;  %v936_v10 = vand.u32 2147483648, %v924_v2  ;;  %v934_v14 = vand.u32 2147483647, %v924_v2  ;;  %vm930_vm13 = vweird.f32 %v924_v2 }
 0x743   : > { %v914_v17 = vmul.f32 %v913_v12, %v901_v41 }
 0x744   : > { %v937_v16 = vor.u32 1.1754944e-38, %v936_v10  ;;  %vm935_vm15 = vcmp.eq.f32.partialorder %v934_v14, 8.507059e+37 }
 0x748   : > { %v1257_v5 = vpop.eup %1256 }
 0x749   : > { %v926_v7 = vmul.f32 %v1257_v5, %v924_v2  ;;  %vm931_vm12 = vweird.f32 %v1257_v5 }
 0x74a   : > { %vm932_vm14 = vmor %vm930_vm13, %vm931_vm12 }
 0x74b   : > { %v927_v9 = vsub.f32 1.0, %v926_v7 }
 0x74d   : > { %v928_v13 = vmul.f32 %v1257_v5, %v927_v9 }
 0x74f   : > { %v929_v15 = vadd.f32 %v1257_v5, %v928_v13 }
 0x751   : > { %v933_v18 = vsel %vm932_vm14, %v1257_v5, %v929_v15 }
 0x752   : > { %v938_v19 = vsel %vm935_vm15, %v937_v16, %v933_v18 }
 0x753   : > { %v939_v0 = vmul.f32 %v938_v19, %v914_v17 }
 0x755   : > { %v1127_v20 = vclamps-f32 %v939_v0, 1.0 }
 0x757   : > { %v942_v22 = vadd.f32 1.0, %v1127_v20 }
 0x759   : > { %v943_v23 = vmul.f32 %v942_v22, %v900_v21 }
 0x75b   : > { %v944_v24 = vpack.c.bf16 %v943_v23, %v943_v23 }
 0x75d   : > { %1004 = vmatmul.bf16.vlgmr.msra.gmra.mxu3 %v944_v24 }
 0x7e0   : > { %v1005_v26 = vpop.f32.mrf.mxu3 }
 0x7e1   : > { %v1006_v27 = vadd.f32 %v1233_v25, %v1005_v26 }
 0x7e3   : > { %v1009_v28 = vadd.f32 %v1006_v27, %v1532_v11 }
 0x7e5   : > { %1010 = vst.msk [vmem:[%s431_s0] sm:$0xff] %vm474_vm0, %v1009_v28 }
 0x7e6   : > { %1285 = shalt.err (!%p1282_p3)
}
 0x7e7   : > { %1178 = dma.vmem_to_hbm [thread:$0]  (%p1439_p5), %s1025_s1, 128, %s1027_s2, %s1012_s29  }
 0x7e8   : > { %v1007_v11 = vpop.f32.mrf.mxu3 }
 0x7e9 PF: > { %p1184_p4 = scmp.ge.s32.totalorder %s1320_s28, 2  ;;  %s1038_s0 = sand.u32 1, %s1308_s25  }
 0x7ea   : > { %s1039_s16 = scalar_lea.sflag [#allocation3], %s1038_s0 }
 0x7eb   : > { %p1181_p7 = pnand %p1184_p4, %p1443_p6 }
 0x7ed   : > { %p1182_p8 = pneg %p1181_p7 }
 0x7ef   : > { %1303 = dma.done.wait (%p1182_p8), %s1039_s16, 128  }
 0x7f0   : > { %1305 = vsyncadd (%p1182_p8), %s1039_s16, 4294967168  ;;  %p23_p9 = scmp.ge.s32.totalorder %s1426_s14, 4   ;;  %s1641_s25 = smov %s1312_s26 }
 0x7f1   : > { %s1642_s26 = smov %s1316_s27  ;;  %s1643_s27 = smov %s1437_s17 }
 0x7f2   : > { %s1644_s28 = smov %s1426_s14  ;;  %25 = sbr.rel (!%p23_p9) target bundleno = 8 (0x8), region = 107 }
 0x7f7   :  { %1045 = vsyncpa [#allocation3], 1 }
 0x7f8   :  { %1047 = vsyncpa [#allocation3 + $0x1], 1 }

</bundles_post_ra>
